<compile_context>
chip_gen: v7x
topology: tpu7x:2x2x1
jax: 0.10.0
libtpu: 0.0.40
codegen_flags: <defaults>
</compile_context>

<pallas_src>
import functools
import math

import jax
import jax.numpy as jnp
from jax.experimental import pallas as pl
from jax.experimental.pallas import tpu as pltpu

_EPS = 1e-6


# --------------------------------------------------------------------------
# Per-generation VMEM budget (v5e/v6e: 128 MiB, v7x: 64 MiB physical)
# --------------------------------------------------------------------------
@functools.lru_cache(maxsize=None)
def _vmem_capacity_bytes():
    try:
        return int(pltpu.get_tpu_info().vmem_capacity_bytes)
    except Exception:
        return 64 * 1024 * 1024  # conservative fallback (v7x-sized)


@functools.lru_cache(maxsize=None)
def _vmem_limit_bytes():
    # leave 25% headroom, never ask for more than 100 MiB
    return int(min(_vmem_capacity_bytes() * 3 // 4, 100 * 1024 * 1024))


def _pick_tq(seq_len):
    """Query-tile size: as large as the per-gen VMEM budget comfortably allows."""
    target = 512 if _vmem_capacity_bytes() >= (96 << 20) else 256
    if seq_len <= target:
        return seq_len
    for cand in (512, 256, 128, 64, 32, 16, 8):
        if cand <= target and seq_len % cand == 0:
            return cand
    return seq_len


# --------------------------------------------------------------------------
# In-kernel helpers
# --------------------------------------------------------------------------
def _layernorm_f32(xf, g, b, eps):
    """Annotated-transformer LayerNorm: g*(x-mean)/(std_unbiased+eps)+b, f32 math."""
    d = xf.shape[-1]
    mean = jnp.mean(xf, axis=-1, keepdims=True)
    xc = xf - mean
    var = jnp.sum(xc * xc, axis=-1, keepdims=True) / (d - 1)  # torch .std() unbiased
    return g * xc / (jnp.sqrt(var) + eps) + b


def _rep_spec(shape):
    """Full-array block, constant index_map -> stays VMEM-resident across grid steps.
    TODO(synk): pipeline_mode=pl.Buffered(1) would halve resident-weight VMEM; left at
    the default buffering to keep lowering risk minimal."""
    nd = len(shape)
    return pl.BlockSpec(shape, lambda b, q, _n=nd: (0,) * _n)


# --------------------------------------------------------------------------
# Fused encoder layer kernel (one pallas_call per layer):
#   qkv     = LN1(x) @ Wqkv + bqkv                 (once per batch, q-tile 0, -> scratch)
#   attn    = softmax(Q K^T / sqrt(dk) + dist_bias, mask) V   (per head, per query tile)
#   y       = x_tile + attn @ Wo + bo
#   out     = y + relu(LN2(y) @ W1 + b1) @ W2 + b2
#   out     = LN_final(out)                        (last layer only)
# --------------------------------------------------------------------------
def _layer_kernel(x_ref, coords_ref, mask_ref,
                  ln1_g_ref, ln1_b_ref, wqkv_ref, bqkv_ref, wo_ref, bo_ref,
                  ln2_g_ref, ln2_b_ref, w1_ref, b1_ref, w2_ref, b2_ref,
                  lnf_g_ref, lnf_b_ref,
                  o_ref, qkv_scr, attn_scr,
                  *, n_heads, tq, eps, final_ln):
    _, S, D = x_ref.shape
    dk = D // n_heads
    cdt = jnp.bfloat16                               # MXU feed dtype, f32 accumulation
    scale = jnp.float32(1.0 / math.sqrt(dk))
    qi = pl.program_id(1)

    # ---- once per batch: LN1 + fused QKV projection over the FULL sequence ----
    # (persists in VMEM scratch across all query tiles of this batch; no recompute)
    @pl.when(qi == 0)
    def _():
        xf = x_ref[0].astype(jnp.float32)            # [S, D]
        xn = _layernorm_f32(xf, ln1_g_ref[0].astype(jnp.float32),
                            ln1_b_ref[0].astype(jnp.float32), eps)
        qkv = jnp.dot(xn.astype(cdt), wqkv_ref[...],
                      preferred_element_type=jnp.float32)
        qkv = qkv + bqkv_ref[0].astype(jnp.float32)  # [S, 3D] f32
        # fold 1/sqrt(dk) into Q once (removes H*TQ*S multiplies per tile)
        qkv_scr[:, pl.ds(0, D)] = (qkv[:, 0:D] * scale).astype(cdt)
        qkv_scr[:, pl.ds(D, 2 * D)] = qkv[:, D:].astype(cdt)

    # ---- per query tile ----
    row0 = pl.multiple_of(qi * tq, tq)
    x_tile = x_ref[0, pl.ds(row0, tq), :].astype(jnp.float32)   # [TQ, D] residual rows

    # dist recomputed from coords (no [B,S,S] HBM traffic per layer).
    # TODO(synk): Gram identity (|a|^2+|b|^2-2ab) loses precision for near-coincident
    # atoms vs torch.cdist's direct-difference path; max(.,0) prevents NaN.
    cq = coords_ref[0, pl.ds(row0, tq), :].astype(jnp.float32)  # [TQ, C]
    ck = coords_ref[0].astype(jnp.float32)                      # [S, C]
    qsq = jnp.sum(cq * cq, axis=-1, keepdims=True)              # [TQ, 1]
    ksq = jnp.sum(ck * ck, axis=-1, keepdims=True)              # [S, 1]
    gram = jax.lax.dot_general(cq, ck, (((1,), (1,)), ((), ())),
                               preferred_element_type=jnp.float32)
    dist = jnp.sqrt(jnp.maximum(qsq + jnp.transpose(ksq) - 2.0 * gram, 0.0))

    # hoisted mask + dist additive bias, shared by every head
    valid = mask_ref[0, 0] > 0                                  # [S] key mask
    bias = jnp.where(valid[None, :], dist, jnp.float32(-1e9))   # [TQ, S] f32

    for h in range(n_heads):                 # static unroll; per-head slices from VMEM
        q = qkv_scr[pl.ds(row0, tq), pl.ds(h * dk, dk)]         # [TQ, dk] bf16 (pre-scaled)
        k = qkv_scr[:, pl.ds(D + h * dk, dk)]                   # [S, dk]  bf16
        v = qkv_scr[:, pl.ds(2 * D + h * dk, dk)]               # [S, dk]  bf16
        s = jax.lax.dot_general(q, k, (((1,), (1,)), ((), ())),
                                preferred_element_type=jnp.float32) + bias
        s = s - jnp.max(s, axis=-1, keepdims=True)
        p = jnp.exp(s)
        p = p * pl.reciprocal(jnp.sum(p, axis=-1, keepdims=True), approx=True)
        attn_scr[:, pl.ds(h * dk, dk)] = jnp.dot(               # head concat via scratch
            p.astype(cdt), v, preferred_element_type=jnp.float32)

    y = jnp.dot(attn_scr[...].astype(cdt), wo_ref[...],
                preferred_element_type=jnp.float32)
    y = x_tile + y + bo_ref[0].astype(jnp.float32)              # residual 1 (f32)

    # ---- FFN sublayer (fused: no HBM round-trip between sublayers) ----
    yn = _layernorm_f32(y, ln2_g_ref[0].astype(jnp.float32),
                        ln2_b_ref[0].astype(jnp.float32), eps)
    hdn = jnp.dot(yn.astype(cdt), w1_ref[...], preferred_element_type=jnp.float32)
    hdn = jnp.maximum(hdn + b1_ref[0].astype(jnp.float32), 0.0)
    out = jnp.dot(hdn.astype(cdt), w2_ref[...], preferred_element_type=jnp.float32)
    out = y + out + b2_ref[0].astype(jnp.float32)               # residual 2 (f32)

    if final_ln:                             # Encoder.norm fused into the last layer
        out = _layernorm_f32(out, lnf_g_ref[0].astype(jnp.float32),
                             lnf_b_ref[0].astype(jnp.float32), eps)

    o_ref[0] = out.astype(o_ref.dtype)


def transformer_layer(x, coords, mask, lp, lnf_g, lnf_b, *, n_heads,
                      final_ln, eps=_EPS):
    B, S, D = x.shape
    C = coords.shape[-1]
    d_ff = lp["w1"].shape[1]
    tq = _pick_tq(S)
    nq = S // tq

    flops = int(B * (2 * S * D * 3 * D            # fused QKV projection
                     + 4 * S * S * D              # QK^T + PV
                     + 2 * S * D * D              # out-proj
                     + 4 * S * D * d_ff           # FFN
                     + 2 * S * S * C))            # dist Gram matmul
    trans = int(B * (n_heads + 1) * S * S)
    bytes_acc = int(4 * B * S * (2 * D + C + 1)                      # x in/out, coords, mask
                    + 2 * (3 * D * D + D * D + 2 * D * d_ff)         # bf16 weights
                    + 4 * (3 * D + d_ff + 8 * D))                    # biases / LN params

    kernel = functools.partial(_layer_kernel, n_heads=n_heads, tq=tq,
                               eps=eps, final_ln=final_ln)
    return pl.pallas_call(
        kernel,
        out_shape=jax.ShapeDtypeStruct((B, S, D), x.dtype),
        grid_spec=pltpu.PrefetchScalarGridSpec(
            num_scalar_prefetch=0,
            grid=(B, nq),
            in_specs=[
                pl.BlockSpec((1, S, D), lambda b, q: (b, 0, 0)),   # x (full seq, resident over q)
                pl.BlockSpec((1, S, C), lambda b, q: (b, 0, 0)),   # coords
                pl.BlockSpec((1, 1, S), lambda b, q: (b, 0, 0)),   # key mask
                _rep_spec((1, D)), _rep_spec((1, D)),              # LN1 gain/bias
                _rep_spec((D, 3 * D)), _rep_spec((1, 3 * D)),      # fused QKV weight/bias
                _rep_spec((D, D)), _rep_spec((1, D)),              # out-proj weight/bias
                _rep_spec((1, D)), _rep_spec((1, D)),              # LN2 gain/bias
                _rep_spec((D, d_ff)), _rep_spec((1, d_ff)),        # W1/b1
                _rep_spec((d_ff, D)), _rep_spec((1, D)),           # W2/b2
                _rep_spec((1, D)), _rep_spec((1, D)),              # final LN (last layer only)
            ],
            out_specs=pl.BlockSpec((1, tq, D), lambda b, q: (b, q, 0)),
            scratch_shapes=[
                pltpu.VMEM((S, 3 * D), jnp.bfloat16),   # full-seq QKV (computed once / batch)
                pltpu.VMEM((tq, D), jnp.float32),       # per-tile head-concat scratch
            ],
        ),
        compiler_params=pltpu.CompilerParams(
            dimension_semantics=("parallel", "arbitrary"),
            vmem_limit_bytes=_vmem_limit_bytes()),
        cost_estimate=pl.CostEstimate(flops=flops, transcendentals=trans,
                                      bytes_accessed=bytes_acc),
    )(x, coords, mask, lp["ln1_g"], lp["ln1_b"], lp["wqkv"], lp["bqkv"],
      lp["wo"], lp["bo"], lp["ln2_g"], lp["ln2_b"], lp["w1"], lp["b1"],
      lp["w2"], lp["b2"], lnf_g, lnf_b)


# --------------------------------------------------------------------------
# Encoder + full module forward
# --------------------------------------------------------------------------
def encoder_forward(enc_params, x, coords, mask, n_heads):
    layers = enc_params["layers"]
    for i, lp in enumerate(layers):
        x = transformer_layer(x, coords, mask, lp,
                              enc_params["lnf_g"], enc_params["lnf_b"],
                              n_heads=n_heads,
                              final_ln=(i == len(layers) - 1))
    return x


def multi_representation_transformer_forward(params, nodes, coords, token_reps,
                                              *, n_heads, mask_id=21):
    # dist = torch.cdist(coords, coords) is recomputed inside each layer kernel from
    # the (S, 3) coords block, so it never touches HBM as a [B, S, S] tensor.
    src_mask = nodes != mask_id                              # [B, S] bool
    # TODO(synk): F.embedding lookup is a gather; kept in plain XLA (no tiled Pallas
    # win at these sizes).
    inp = jnp.take(params["embed"], nodes, axis=0)           # [B, S, D] f32 residual stream
    inp = jax.lax.dynamic_update_slice(inp, token_reps.astype(inp.dtype), (0, 0, 0))
    mask3 = src_mask[:, None, :].astype(jnp.float32)         # src_mask.unsqueeze(1)
    enc = encoder_forward(params["encoder"], inp, coords, mask3, n_heads)
    # TODO(synk): `generator` module is not defined in the provided source; identity.
    return enc


# --------------------------------------------------------------------------
# Deterministic parameter initialization
# (QKV pre-fused into one [D, 3D] weight; matmul weights stored in bf16 so the MXU
#  is fed bf16 with f32 accumulation; biases / LN params stay f32)
# --------------------------------------------------------------------------
def init_params(key, vocab, d_model, d_ff, n_layers, wdtype=jnp.bfloat16):
    def dense(k, din, dout):
        w = (jax.random.normal(k, (din, dout), jnp.float32)
             * (1.0 / math.sqrt(din))).astype(wdtype)
        b = jnp.zeros((1, dout), jnp.float32)
        return w, b

    keys = jax.random.split(key, n_layers + 1)
    layers = []
    for lk in keys[:n_layers]:
        ks = jax.random.split(lk, 6)
        wq, bq = dense(ks[0], d_model, d_model)
        wk, bk = dense(ks[1], d_model, d_model)
        wv, bv = dense(ks[2], d_model, d_model)
        wo, bo = dense(ks[3], d_model, d_model)
        w1, b1 = dense(ks[4], d_model, d_ff)
        w2, b2 = dense(ks[5], d_ff, d_model)
        layers.append(dict(
            wqkv=jnp.concatenate([wq, wk, wv], axis=1),      # [D, 3D] bf16 fused QKV
            bqkv=jnp.concatenate([bq, bk, bv], axis=1),      # [1, 3D] f32
            wo=wo, bo=bo, w1=w1, b1=b1, w2=w2, b2=b2,
            ln1_g=jnp.ones((1, d_model), jnp.float32),
            ln1_b=jnp.zeros((1, d_model), jnp.float32),
            ln2_g=jnp.ones((1, d_model), jnp.float32),
            ln2_b=jnp.zeros((1, d_model), jnp.float32),
        ))
    embed = jax.random.normal(keys[n_layers], (vocab, d_model), jnp.float32) * 0.1
    return dict(
        embed=embed,
        encoder=dict(
            layers=layers,
            lnf_g=jnp.ones((1, d_model), jnp.float32),
            lnf_b=jnp.zeros((1, d_model), jnp.float32),
        ),
    )


if __name__ == "__main__":
    B, S, D, H, D_FF, N_LAYERS = 2, 8, 32, 4, 64, 2
    VOCAB, MASK_ID, T_REP = 24, 21, 4

    key = jax.random.PRNGKey(0)
    kn, kc, kt, kp = jax.random.split(key, 4)

    nodes = jax.random.randint(kn, (B, S), 0, VOCAB - 4, dtype=jnp.int32)
    nodes = nodes.at[1, S - 1].set(MASK_ID)                  # one masked position
    coords = jax.random.normal(kc, (B, S, 3), jnp.float32)
    token_reps = jax.random.normal(kt, (B, T_REP, D), jnp.float32)

    params = init_params(kp, VOCAB, D, D_FF, N_LAYERS)

    fwd = jax.jit(functools.partial(
        multi_representation_transformer_forward, n_heads=H, mask_id=MASK_ID))
    out = jax.block_until_ready(fwd(params, nodes, coords, token_reps))

    assert out.shape == (B, S, D) and bool(jnp.all(jnp.isfinite(out)))
    print("KERNEL_OK")
</pallas_src>

<mosaic_0001>
module attributes {stable_mosaic.version = 11 : i64} {
  func.func @_layer_kernel(%arg0: i32, %arg1: i32, %arg2: memref<1x8x32xf32, #tpu.memory_space<vmem>>, %arg3: memref<1x8x3xf32, #tpu.memory_space<vmem>>, %arg4: memref<1x1x8xf32, #tpu.memory_space<vmem>>, %arg5: memref<1x32xf32, #tpu.memory_space<vmem>>, %arg6: memref<1x32xf32, #tpu.memory_space<vmem>>, %arg7: memref<32x96xbf16, #tpu.memory_space<vmem>>, %arg8: memref<1x96xf32, #tpu.memory_space<vmem>>, %arg9: memref<32x32xbf16, #tpu.memory_space<vmem>>, %arg10: memref<1x32xf32, #tpu.memory_space<vmem>>, %arg11: memref<1x32xf32, #tpu.memory_space<vmem>>, %arg12: memref<1x32xf32, #tpu.memory_space<vmem>>, %arg13: memref<32x64xbf16, #tpu.memory_space<vmem>>, %arg14: memref<1x64xf32, #tpu.memory_space<vmem>>, %arg15: memref<64x32xbf16, #tpu.memory_space<vmem>>, %arg16: memref<1x32xf32, #tpu.memory_space<vmem>>, %arg17: memref<1x32xf32, #tpu.memory_space<vmem>>, %arg18: memref<1x32xf32, #tpu.memory_space<vmem>>, %arg19: memref<1x8x32xf32, #tpu.memory_space<vmem>>, %arg20: memref<8x96xbf16, #tpu.memory_space<vmem>>, %arg21: memref<8x32xf32, #tpu.memory_space<vmem>>) attributes {dimension_semantics = [#tpu.dimension_semantics<parallel>, #tpu.dimension_semantics<arbitrary>], iteration_bounds = array<i64: 2, 1>, scalar_prefetch = 0 : i64, scratch_operands = 2 : i64, tpu.core_type = #tpu.core_type<tc>, window_params = [{transform_indices = @transform_0, window_bounds = array<i64: 1, 8, 32>}, {transform_indices = @transform_1, window_bounds = array<i64: 1, 8, 3>}, {transform_indices = @transform_2, window_bounds = array<i64: 1, 1, 8>}, {pipeline_mode = #tpu.pipeline_mode<synchronous>, transform_indices = @transform_3, window_bounds = array<i64: 1, 32>}, {pipeline_mode = #tpu.pipeline_mode<synchronous>, transform_indices = @transform_4, window_bounds = array<i64: 1, 32>}, {pipeline_mode = #tpu.pipeline_mode<synchronous>, transform_indices = @transform_5, window_bounds = array<i64: 32, 96>}, {pipeline_mode = #tpu.pipeline_mode<synchronous>, transform_indices = @transform_6, window_bounds = array<i64: 1, 96>}, {pipeline_mode = #tpu.pipeline_mode<synchronous>, transform_indices = @transform_7, window_bounds = array<i64: 32, 32>}, {pipeline_mode = #tpu.pipeline_mode<synchronous>, transform_indices = @transform_8, window_bounds = array<i64: 1, 32>}, {pipeline_mode = #tpu.pipeline_mode<synchronous>, transform_indices = @transform_9, window_bounds = array<i64: 1, 32>}, {pipeline_mode = #tpu.pipeline_mode<synchronous>, transform_indices = @transform_10, window_bounds = array<i64: 1, 32>}, {pipeline_mode = #tpu.pipeline_mode<synchronous>, transform_indices = @transform_11, window_bounds = array<i64: 32, 64>}, {pipeline_mode = #tpu.pipeline_mode<synchronous>, transform_indices = @transform_12, window_bounds = array<i64: 1, 64>}, {pipeline_mode = #tpu.pipeline_mode<synchronous>, transform_indices = @transform_13, window_bounds = array<i64: 64, 32>}, {pipeline_mode = #tpu.pipeline_mode<synchronous>, transform_indices = @transform_14, window_bounds = array<i64: 1, 32>}, {pipeline_mode = #tpu.pipeline_mode<synchronous>, transform_indices = @transform_15, window_bounds = array<i64: 1, 32>}, {pipeline_mode = #tpu.pipeline_mode<synchronous>, transform_indices = @transform_16, window_bounds = array<i64: 1, 32>}, {transform_indices = @transform_17, window_bounds = array<i64: 1, 8, 32>}]} {
    %c0_i32 = arith.constant 0 : i32
    %0 = arith.cmpi eq, %arg1, %c0_i32 : i32
    %1 = arith.extui %0 : i1 to i32
    %cst = arith.constant 0.353553385 : f32
    %c0_i32_0 = arith.constant 0 : i32
    %2 = arith.cmpi ne, %1, %c0_i32_0 : i32
    scf.if %2 {
      %c0_80 = arith.constant 0 : index
      %c0_81 = arith.constant 0 : index
      %c0_82 = arith.constant 0 : index
      %173 = vector.load %arg2[%c0_80, %c0_81, %c0_82] : memref<1x8x32xf32, #tpu.memory_space<vmem>>, vector<1x8x32xf32>
      %174 = vector.shape_cast %173 : vector<1x8x32xf32> to vector<8x32xf32>
      %c0_83 = arith.constant 0 : index
      %c0_84 = arith.constant 0 : index
      %175 = vector.load %arg5[%c0_83, %c0_84] : memref<1x32xf32, #tpu.memory_space<vmem>>, vector<1x32xf32>
      %176 = vector.shape_cast %175 : vector<1x32xf32> to vector<32xf32>
      %c0_85 = arith.constant 0 : index
      %c0_86 = arith.constant 0 : index
      %177 = vector.load %arg6[%c0_85, %c0_86] : memref<1x32xf32, #tpu.memory_space<vmem>>, vector<1x32xf32>
      %178 = vector.shape_cast %177 : vector<1x32xf32> to vector<32xf32>
      %cst_87 = arith.constant dense<0.000000e+00> : vector<8xf32>
      %179 = vector.multi_reduction <add>, %174, %cst_87 [1] : vector<8x32xf32> to vector<8xf32>
      %180 = vector.shape_cast %179 : vector<8xf32> to vector<8x1xf32>
      %cst_88 = arith.constant 3.200000e+01 : f32
      %181 = vector.broadcast %cst_88 : f32 to vector<8x1xf32>
      %182 = arith.divf %180, %181 : vector<8x1xf32>
      %183 = vector.broadcast %182 : vector<8x1xf32> to vector<8x32xf32>
      %184 = arith.subf %174, %183 : vector<8x32xf32>
      %185 = arith.mulf %184, %184 : vector<8x32xf32>
      %cst_89 = arith.constant dense<0.000000e+00> : vector<8xf32>
      %186 = vector.multi_reduction <add>, %185, %cst_89 [1] : vector<8x32xf32> to vector<8xf32>
      %187 = vector.shape_cast %186 : vector<8xf32> to vector<8x1xf32>
      %cst_90 = arith.constant 3.100000e+01 : f32
      %188 = vector.broadcast %cst_90 : f32 to vector<8x1xf32>
      %189 = arith.divf %187, %188 : vector<8x1xf32>
      %190 = vector.shape_cast %176 : vector<32xf32> to vector<1x32xf32>
      %191 = vector.broadcast %190 : vector<1x32xf32> to vector<8x32xf32>
      %192 = arith.mulf %191, %184 : vector<8x32xf32>
      %193 = math.sqrt %189 : vector<8x1xf32>
      %cst_91 = arith.constant 9.99999997E-7 : f32
      %194 = vector.broadcast %cst_91 : f32 to vector<8x1xf32>
      %195 = arith.addf %193, %194 : vector<8x1xf32>
      %196 = vector.broadcast %195 : vector<8x1xf32> to vector<8x32xf32>
      %197 = arith.divf %192, %196 : vector<8x32xf32>
      %198 = vector.shape_cast %178 : vector<32xf32> to vector<1x32xf32>
      %199 = vector.broadcast %198 : vector<1x32xf32> to vector<8x32xf32>
      %200 = arith.addf %197, %199 : vector<8x32xf32>
      %201 = arith.truncf %200 : vector<8x32xf32> to vector<8x32xbf16>
      %c0_92 = arith.constant 0 : index
      %c0_93 = arith.constant 0 : index
      %202 = vector.load %arg7[%c0_92, %c0_93] : memref<32x96xbf16, #tpu.memory_space<vmem>>, vector<32x96xbf16>
      %cst_94 = arith.constant dense<0.000000e+00> : vector<8x96xf32>
      %203 = tpu.matmul %201, %202, %cst_94 {dimension_numbers = #tpu.dot_dimension_numbers<[1], [0], [0], [1], [0, 0, 1, 1], [], []>} : vector<8x32xbf16>, vector<32x96xbf16>, vector<8x96xf32> -> vector<8x96xf32>
      %c0_95 = arith.constant 0 : index
      %c0_96 = arith.constant 0 : index
      %204 = vector.load %arg8[%c0_95, %c0_96] : memref<1x96xf32, #tpu.memory_space<vmem>>, vector<1x96xf32>
      %205 = vector.shape_cast %204 : vector<1x96xf32> to vector<96xf32>
      %206 = vector.shape_cast %205 : vector<96xf32> to vector<1x96xf32>
      %207 = vector.broadcast %206 : vector<1x96xf32> to vector<8x96xf32>
      %208 = arith.addf %203, %207 : vector<8x96xf32>
      %209 = vector.extract_strided_slice %208 {offsets = [0, 0], sizes = [8, 32], strides = [1, 1]} : vector<8x96xf32> to vector<8x32xf32>
      %210 = vector.broadcast %cst : f32 to vector<8x32xf32>
      %211 = arith.mulf %209, %210 : vector<8x32xf32>
      %212 = arith.truncf %211 : vector<8x32xf32> to vector<8x32xbf16>
      %c0_97 = arith.constant 0 : index
      %c0_98 = arith.constant 0 : index
      %213 = vector.load %arg20[%c0_97, %c0_98] : memref<8x96xbf16, #tpu.memory_space<vmem>>, vector<8x32xbf16>
      tpu.vector_store %arg20[%c0_97, %c0_98], %212 {strides = array<i32>} : memref<8x96xbf16, #tpu.memory_space<vmem>>, vector<8x32xbf16>,
      %214 = vector.extract_strided_slice %208 {offsets = [0, 32], sizes = [8, 64], strides = [1, 1]} : vector<8x96xf32> to vector<8x64xf32>
      %215 = arith.truncf %214 : vector<8x64xf32> to vector<8x64xbf16>
      %c0_99 = arith.constant 0 : index
      %c32_100 = arith.constant 32 : index
      %216 = vector.load %arg20[%c0_99, %c32_100] : memref<8x96xbf16, #tpu.memory_space<vmem>>, vector<8x64xbf16>
      tpu.vector_store %arg20[%c0_99, %c32_100], %215 {strides = array<i32>} : memref<8x96xbf16, #tpu.memory_space<vmem>>, vector<8x64xbf16>,
    } else {
    }
    %c8_i32 = arith.constant 8 : i32
    %3 = arith.muli %arg1, %c8_i32 : i32
    %4 = tpu.assume_multiple %3, 8 : i32
    %c0 = arith.constant 0 : index
    %5 = arith.index_cast %4 : i32 to index
    %c0_1 = arith.constant 0 : index
    %6 = vector.load %arg2[%c0, %5, %c0_1] : memref<1x8x32xf32, #tpu.memory_space<vmem>>, vector<1x8x32xf32>
    %7 = vector.shape_cast %6 : vector<1x8x32xf32> to vector<8x32xf32>
    %c0_2 = arith.constant 0 : index
    %8 = arith.index_cast %4 : i32 to index
    %c0_3 = arith.constant 0 : index
    %9 = vector.load %arg3[%c0_2, %8, %c0_3] : memref<1x8x3xf32, #tpu.memory_space<vmem>>, vector<1x8x3xf32>
    %10 = vector.shape_cast %9 : vector<1x8x3xf32> to vector<8x3xf32>
    %c0_4 = arith.constant 0 : index
    %c0_5 = arith.constant 0 : index
    %c0_6 = arith.constant 0 : index
    %11 = vector.load %arg3[%c0_4, %c0_5, %c0_6] : memref<1x8x3xf32, #tpu.memory_space<vmem>>, vector<1x8x3xf32>
    %12 = vector.shape_cast %11 : vector<1x8x3xf32> to vector<8x3xf32>
    %13 = arith.mulf %10, %10 : vector<8x3xf32>
    %cst_7 = arith.constant dense<0.000000e+00> : vector<8xf32>
    %14 = vector.multi_reduction <add>, %13, %cst_7 [1] : vector<8x3xf32> to vector<8xf32>
    %15 = vector.shape_cast %14 : vector<8xf32> to vector<8x1xf32>
    %16 = arith.mulf %12, %12 : vector<8x3xf32>
    %cst_8 = arith.constant dense<0.000000e+00> : vector<8xf32>
    %17 = vector.multi_reduction <add>, %16, %cst_8 [1] : vector<8x3xf32> to vector<8xf32>
    %18 = vector.shape_cast %17 : vector<8xf32> to vector<8x1xf32>
    %cst_9 = arith.constant dense<0.000000e+00> : vector<8x8xf32>
    %19 = tpu.matmul %10, %12, %cst_9 {dimension_numbers = #tpu.dot_dimension_numbers<[1], [1], [0], [0], [0, 0, 1, 0], [], []>} : vector<8x3xf32>, vector<8x3xf32>, vector<8x8xf32> -> vector<8x8xf32>
    %20 = tpu.transpose %18, [1, 0] : vector<8x1xf32> -> vector<1x8xf32>
    %21 = vector.broadcast %15 : vector<8x1xf32> to vector<8x8xf32>
    %22 = vector.broadcast %20 : vector<1x8xf32> to vector<8x8xf32>
    %23 = arith.addf %21, %22 : vector<8x8xf32>
    %cst_10 = arith.constant 2.000000e+00 : f32
    %24 = vector.broadcast %cst_10 : f32 to vector<8x8xf32>
    %25 = arith.mulf %24, %19 : vector<8x8xf32>
    %26 = arith.subf %23, %25 : vector<8x8xf32>
    %cst_11 = arith.constant 0.000000e+00 : f32
    %27 = vector.broadcast %cst_11 : f32 to vector<8x8xf32>
    %28 = arith.maximumf %26, %27 : vector<8x8xf32>
    %29 = math.sqrt %28 : vector<8x8xf32>
    %c0_12 = arith.constant 0 : index
    %c0_13 = arith.constant 0 : index
    %c0_14 = arith.constant 0 : index
    %30 = vector.load %arg4[%c0_12, %c0_13, %c0_14] : memref<1x1x8xf32, #tpu.memory_space<vmem>>, vector<1x1x8xf32>
    %31 = vector.shape_cast %30 : vector<1x1x8xf32> to vector<8xf32>
    %cst_15 = arith.constant 0.000000e+00 : f32
    %32 = vector.broadcast %cst_15 : f32 to vector<8xf32>
    %33 = arith.cmpf ogt, %31, %32 : vector<8xf32>
    %34 = vector.shape_cast %33 : vector<8xi1> to vector<1x8xi1>
    %cst_16 = arith.constant -1.000000e+09 : f32
    %35 = vector.shape_cast %34 : vector<1x8xi1> to vector<1x8xi1>
    %36 = vector.broadcast %35 : vector<1x8xi1> to vector<8x8xi1>
    %37 = vector.broadcast %cst_16 : f32 to vector<8x8xf32>
    %38 = arith.select %36, %29, %37 : vector<8x8xi1>, vector<8x8xf32>
    %39 = arith.index_cast %4 : i32 to index
    %c0_17 = arith.constant 0 : index
    %40 = vector.load %arg20[%39, %c0_17] : memref<8x96xbf16, #tpu.memory_space<vmem>>, vector<8x8xbf16>
    %c0_18 = arith.constant 0 : index
    %c32 = arith.constant 32 : index
    %41 = vector.load %arg20[%c0_18, %c32] : memref<8x96xbf16, #tpu.memory_space<vmem>>, vector<8x8xbf16>
    %c0_19 = arith.constant 0 : index
    %c64 = arith.constant 64 : index
    %42 = vector.load %arg20[%c0_19, %c64] : memref<8x96xbf16, #tpu.memory_space<vmem>>, vector<8x8xbf16>
    %cst_20 = arith.constant dense<0.000000e+00> : vector<8x8xf32>
    %43 = tpu.matmul %40, %41, %cst_20 {dimension_numbers = #tpu.dot_dimension_numbers<[1], [1], [0], [0], [0, 0, 1, 0], [], []>} : vector<8x8xbf16>, vector<8x8xbf16>, vector<8x8xf32> -> vector<8x8xf32>
    %44 = arith.addf %43, %38 : vector<8x8xf32>
    %cst_21 = arith.constant dense<0xFF800000> : vector<8xf32>
    %45 = vector.multi_reduction <maximumf>, %44, %cst_21 [1] : vector<8x8xf32> to vector<8xf32>
    %46 = vector.shape_cast %45 : vector<8xf32> to vector<8x1xf32>
    %47 = vector.broadcast %46 : vector<8x1xf32> to vector<8x8xf32>
    %48 = arith.subf %44, %47 : vector<8x8xf32>
    %49 = math.exp %48 : vector<8x8xf32>
    %cst_22 = arith.constant dense<0.000000e+00> : vector<8xf32>
    %50 = vector.multi_reduction <add>, %49, %cst_22 [1] : vector<8x8xf32> to vector<8xf32>
    %51 = vector.shape_cast %50 : vector<8xf32> to vector<8x1xf32>
    %52 = tpu.reciprocal %51 {approx = true} : vector<8x1xf32> -> vector<8x1xf32>
    %53 = vector.broadcast %52 : vector<8x1xf32> to vector<8x8xf32>
    %54 = arith.mulf %49, %53 : vector<8x8xf32>
    %55 = arith.truncf %54 : vector<8x8xf32> to vector<8x8xbf16>
    %cst_23 = arith.constant dense<0.000000e+00> : vector<8x8xf32>
    %56 = tpu.matmul %55, %42, %cst_23 {dimension_numbers = #tpu.dot_dimension_numbers<[1], [0], [0], [1], [0, 0, 1, 1], [], []>} : vector<8x8xbf16>, vector<8x8xbf16>, vector<8x8xf32> -> vector<8x8xf32>
    %c0_24 = arith.constant 0 : index
    %c0_25 = arith.constant 0 : index
    %57 = vector.load %arg21[%c0_24, %c0_25] : memref<8x32xf32, #tpu.memory_space<vmem>>, vector<8x8xf32>
    tpu.vector_store %arg21[%c0_24, %c0_25], %56 {strides = array<i32>} : memref<8x32xf32, #tpu.memory_space<vmem>>, vector<8x8xf32>,
    %58 = arith.index_cast %4 : i32 to index
    %c8 = arith.constant 8 : index
    %59 = vector.load %arg20[%58, %c8] : memref<8x96xbf16, #tpu.memory_space<vmem>>, vector<8x8xbf16>
    %c0_26 = arith.constant 0 : index
    %c40 = arith.constant 40 : index
    %60 = vector.load %arg20[%c0_26, %c40] : memref<8x96xbf16, #tpu.memory_space<vmem>>, vector<8x8xbf16>
    %c0_27 = arith.constant 0 : index
    %c72 = arith.constant 72 : index
    %61 = vector.load %arg20[%c0_27, %c72] : memref<8x96xbf16, #tpu.memory_space<vmem>>, vector<8x8xbf16>
    %cst_28 = arith.constant dense<0.000000e+00> : vector<8x8xf32>
    %62 = tpu.matmul %59, %60, %cst_28 {dimension_numbers = #tpu.dot_dimension_numbers<[1], [1], [0], [0], [0, 0, 1, 0], [], []>} : vector<8x8xbf16>, vector<8x8xbf16>, vector<8x8xf32> -> vector<8x8xf32>
    %63 = arith.addf %62, %38 : vector<8x8xf32>
    %cst_29 = arith.constant dense<0xFF800000> : vector<8xf32>
    %64 = vector.multi_reduction <maximumf>, %63, %cst_29 [1] : vector<8x8xf32> to vector<8xf32>
    %65 = vector.shape_cast %64 : vector<8xf32> to vector<8x1xf32>
    %66 = vector.broadcast %65 : vector<8x1xf32> to vector<8x8xf32>
    %67 = arith.subf %63, %66 : vector<8x8xf32>
    %68 = math.exp %67 : vector<8x8xf32>
    %cst_30 = arith.constant dense<0.000000e+00> : vector<8xf32>
    %69 = vector.multi_reduction <add>, %68, %cst_30 [1] : vector<8x8xf32> to vector<8xf32>
    %70 = vector.shape_cast %69 : vector<8xf32> to vector<8x1xf32>
    %71 = tpu.reciprocal %70 {approx = true} : vector<8x1xf32> -> vector<8x1xf32>
    %72 = vector.broadcast %71 : vector<8x1xf32> to vector<8x8xf32>
    %73 = arith.mulf %68, %72 : vector<8x8xf32>
    %74 = arith.truncf %73 : vector<8x8xf32> to vector<8x8xbf16>
    %cst_31 = arith.constant dense<0.000000e+00> : vector<8x8xf32>
    %75 = tpu.matmul %74, %61, %cst_31 {dimension_numbers = #tpu.dot_dimension_numbers<[1], [0], [0], [1], [0, 0, 1, 1], [], []>} : vector<8x8xbf16>, vector<8x8xbf16>, vector<8x8xf32> -> vector<8x8xf32>
    %c0_32 = arith.constant 0 : index
    %c8_33 = arith.constant 8 : index
    %76 = vector.load %arg21[%c0_32, %c8_33] : memref<8x32xf32, #tpu.memory_space<vmem>>, vector<8x8xf32>
    tpu.vector_store %arg21[%c0_32, %c8_33], %75 {strides = array<i32>} : memref<8x32xf32, #tpu.memory_space<vmem>>, vector<8x8xf32>,
    %77 = arith.index_cast %4 : i32 to index
    %c16 = arith.constant 16 : index
    %78 = vector.load %arg20[%77, %c16] : memref<8x96xbf16, #tpu.memory_space<vmem>>, vector<8x8xbf16>
    %c0_34 = arith.constant 0 : index
    %c48 = arith.constant 48 : index
    %79 = vector.load %arg20[%c0_34, %c48] : memref<8x96xbf16, #tpu.memory_space<vmem>>, vector<8x8xbf16>
    %c0_35 = arith.constant 0 : index
    %c80 = arith.constant 80 : index
    %80 = vector.load %arg20[%c0_35, %c80] : memref<8x96xbf16, #tpu.memory_space<vmem>>, vector<8x8xbf16>
    %cst_36 = arith.constant dense<0.000000e+00> : vector<8x8xf32>
    %81 = tpu.matmul %78, %79, %cst_36 {dimension_numbers = #tpu.dot_dimension_numbers<[1], [1], [0], [0], [0, 0, 1, 0], [], []>} : vector<8x8xbf16>, vector<8x8xbf16>, vector<8x8xf32> -> vector<8x8xf32>
    %82 = arith.addf %81, %38 : vector<8x8xf32>
    %cst_37 = arith.constant dense<0xFF800000> : vector<8xf32>
    %83 = vector.multi_reduction <maximumf>, %82, %cst_37 [1] : vector<8x8xf32> to vector<8xf32>
    %84 = vector.shape_cast %83 : vector<8xf32> to vector<8x1xf32>
    %85 = vector.broadcast %84 : vector<8x1xf32> to vector<8x8xf32>
    %86 = arith.subf %82, %85 : vector<8x8xf32>
    %87 = math.exp %86 : vector<8x8xf32>
    %cst_38 = arith.constant dense<0.000000e+00> : vector<8xf32>
    %88 = vector.multi_reduction <add>, %87, %cst_38 [1] : vector<8x8xf32> to vector<8xf32>
    %89 = vector.shape_cast %88 : vector<8xf32> to vector<8x1xf32>
    %90 = tpu.reciprocal %89 {approx = true} : vector<8x1xf32> -> vector<8x1xf32>
    %91 = vector.broadcast %90 : vector<8x1xf32> to vector<8x8xf32>
    %92 = arith.mulf %87, %91 : vector<8x8xf32>
    %93 = arith.truncf %92 : vector<8x8xf32> to vector<8x8xbf16>
    %cst_39 = arith.constant dense<0.000000e+00> : vector<8x8xf32>
    %94 = tpu.matmul %93, %80, %cst_39 {dimension_numbers = #tpu.dot_dimension_numbers<[1], [0], [0], [1], [0, 0, 1, 1], [], []>} : vector<8x8xbf16>, vector<8x8xbf16>, vector<8x8xf32> -> vector<8x8xf32>
    %c0_40 = arith.constant 0 : index
    %c16_41 = arith.constant 16 : index
    %95 = vector.load %arg21[%c0_40, %c16_41] : memref<8x32xf32, #tpu.memory_space<vmem>>, vector<8x8xf32>
    tpu.vector_store %arg21[%c0_40, %c16_41], %94 {strides = array<i32>} : memref<8x32xf32, #tpu.memory_space<vmem>>, vector<8x8xf32>,
    %96 = arith.index_cast %4 : i32 to index
    %c24 = arith.constant 24 : index
    %97 = vector.load %arg20[%96, %c24] : memref<8x96xbf16, #tpu.memory_space<vmem>>, vector<8x8xbf16>
    %c0_42 = arith.constant 0 : index
    %c56 = arith.constant 56 : index
    %98 = vector.load %arg20[%c0_42, %c56] : memref<8x96xbf16, #tpu.memory_space<vmem>>, vector<8x8xbf16>
    %c0_43 = arith.constant 0 : index
    %c88 = arith.constant 88 : index
    %99 = vector.load %arg20[%c0_43, %c88] : memref<8x96xbf16, #tpu.memory_space<vmem>>, vector<8x8xbf16>
    %cst_44 = arith.constant dense<0.000000e+00> : vector<8x8xf32>
    %100 = tpu.matmul %97, %98, %cst_44 {dimension_numbers = #tpu.dot_dimension_numbers<[1], [1], [0], [0], [0, 0, 1, 0], [], []>} : vector<8x8xbf16>, vector<8x8xbf16>, vector<8x8xf32> -> vector<8x8xf32>
    %101 = arith.addf %100, %38 : vector<8x8xf32>
    %cst_45 = arith.constant dense<0xFF800000> : vector<8xf32>
    %102 = vector.multi_reduction <maximumf>, %101, %cst_45 [1] : vector<8x8xf32> to vector<8xf32>
    %103 = vector.shape_cast %102 : vector<8xf32> to vector<8x1xf32>
    %104 = vector.broadcast %103 : vector<8x1xf32> to vector<8x8xf32>
    %105 = arith.subf %101, %104 : vector<8x8xf32>
    %106 = math.exp %105 : vector<8x8xf32>
    %cst_46 = arith.constant dense<0.000000e+00> : vector<8xf32>
    %107 = vector.multi_reduction <add>, %106, %cst_46 [1] : vector<8x8xf32> to vector<8xf32>
    %108 = vector.shape_cast %107 : vector<8xf32> to vector<8x1xf32>
    %109 = tpu.reciprocal %108 {approx = true} : vector<8x1xf32> -> vector<8x1xf32>
    %110 = vector.broadcast %109 : vector<8x1xf32> to vector<8x8xf32>
    %111 = arith.mulf %106, %110 : vector<8x8xf32>
    %112 = arith.truncf %111 : vector<8x8xf32> to vector<8x8xbf16>
    %cst_47 = arith.constant dense<0.000000e+00> : vector<8x8xf32>
    %113 = tpu.matmul %112, %99, %cst_47 {dimension_numbers = #tpu.dot_dimension_numbers<[1], [0], [0], [1], [0, 0, 1, 1], [], []>} : vector<8x8xbf16>, vector<8x8xbf16>, vector<8x8xf32> -> vector<8x8xf32>
    %c0_48 = arith.constant 0 : index
    %c24_49 = arith.constant 24 : index
    %114 = vector.load %arg21[%c0_48, %c24_49] : memref<8x32xf32, #tpu.memory_space<vmem>>, vector<8x8xf32>
    tpu.vector_store %arg21[%c0_48, %c24_49], %113 {strides = array<i32>} : memref<8x32xf32, #tpu.memory_space<vmem>>, vector<8x8xf32>,
    %c0_50 = arith.constant 0 : index
    %c0_51 = arith.constant 0 : index
    %115 = vector.load %arg21[%c0_50, %c0_51] : memref<8x32xf32, #tpu.memory_space<vmem>>, vector<8x32xf32>
    %116 = arith.truncf %115 : vector<8x32xf32> to vector<8x32xbf16>
    %c0_52 = arith.constant 0 : index
    %c0_53 = arith.constant 0 : index
    %117 = vector.load %arg9[%c0_52, %c0_53] : memref<32x32xbf16, #tpu.memory_space<vmem>>, vector<32x32xbf16>
    %cst_54 = arith.constant dense<0.000000e+00> : vector<8x32xf32>
    %118 = tpu.matmul %116, %117, %cst_54 {dimension_numbers = #tpu.dot_dimension_numbers<[1], [0], [0], [1], [0, 0, 1, 1], [], []>} : vector<8x32xbf16>, vector<32x32xbf16>, vector<8x32xf32> -> vector<8x32xf32>
    %119 = arith.addf %7, %118 : vector<8x32xf32>
    %c0_55 = arith.constant 0 : index
    %c0_56 = arith.constant 0 : index
    %120 = vector.load %arg10[%c0_55, %c0_56] : memref<1x32xf32, #tpu.memory_space<vmem>>, vector<1x32xf32>
    %121 = vector.shape_cast %120 : vector<1x32xf32> to vector<32xf32>
    %122 = vector.shape_cast %121 : vector<32xf32> to vector<1x32xf32>
    %123 = vector.broadcast %122 : vector<1x32xf32> to vector<8x32xf32>
    %124 = arith.addf %119, %123 : vector<8x32xf32>
    %c0_57 = arith.constant 0 : index
    %c0_58 = arith.constant 0 : index
    %125 = vector.load %arg11[%c0_57, %c0_58] : memref<1x32xf32, #tpu.memory_space<vmem>>, vector<1x32xf32>
    %126 = vector.shape_cast %125 : vector<1x32xf32> to vector<32xf32>
    %c0_59 = arith.constant 0 : index
    %c0_60 = arith.constant 0 : index
    %127 = vector.load %arg12[%c0_59, %c0_60] : memref<1x32xf32, #tpu.memory_space<vmem>>, vector<1x32xf32>
    %128 = vector.shape_cast %127 : vector<1x32xf32> to vector<32xf32>
    %cst_61 = arith.constant dense<0.000000e+00> : vector<8xf32>
    %129 = vector.multi_reduction <add>, %124, %cst_61 [1] : vector<8x32xf32> to vector<8xf32>
    %130 = vector.shape_cast %129 : vector<8xf32> to vector<8x1xf32>
    %cst_62 = arith.constant 3.200000e+01 : f32
    %131 = vector.broadcast %cst_62 : f32 to vector<8x1xf32>
    %132 = arith.divf %130, %131 : vector<8x1xf32>
    %133 = vector.broadcast %132 : vector<8x1xf32> to vector<8x32xf32>
    %134 = arith.subf %124, %133 : vector<8x32xf32>
    %135 = arith.mulf %134, %134 : vector<8x32xf32>
    %cst_63 = arith.constant dense<0.000000e+00> : vector<8xf32>
    %136 = vector.multi_reduction <add>, %135, %cst_63 [1] : vector<8x32xf32> to vector<8xf32>
    %137 = vector.shape_cast %136 : vector<8xf32> to vector<8x1xf32>
    %cst_64 = arith.constant 3.100000e+01 : f32
    %138 = vector.broadcast %cst_64 : f32 to vector<8x1xf32>
    %139 = arith.divf %137, %138 : vector<8x1xf32>
    %140 = vector.shape_cast %126 : vector<32xf32> to vector<1x32xf32>
    %141 = vector.broadcast %140 : vector<1x32xf32> to vector<8x32xf32>
    %142 = arith.mulf %141, %134 : vector<8x32xf32>
    %143 = math.sqrt %139 : vector<8x1xf32>
    %cst_65 = arith.constant 9.99999997E-7 : f32
    %144 = vector.broadcast %cst_65 : f32 to vector<8x1xf32>
    %145 = arith.addf %143, %144 : vector<8x1xf32>
    %146 = vector.broadcast %145 : vector<8x1xf32> to vector<8x32xf32>
    %147 = arith.divf %142, %146 : vector<8x32xf32>
    %148 = vector.shape_cast %128 : vector<32xf32> to vector<1x32xf32>
    %149 = vector.broadcast %148 : vector<1x32xf32> to vector<8x32xf32>
    %150 = arith.addf %147, %149 : vector<8x32xf32>
    %151 = arith.truncf %150 : vector<8x32xf32> to vector<8x32xbf16>
    %c0_66 = arith.constant 0 : index
    %c0_67 = arith.constant 0 : index
    %152 = vector.load %arg13[%c0_66, %c0_67] : memref<32x64xbf16, #tpu.memory_space<vmem>>, vector<32x64xbf16>
    %cst_68 = arith.constant dense<0.000000e+00> : vector<8x64xf32>
    %153 = tpu.matmul %151, %152, %cst_68 {dimension_numbers = #tpu.dot_dimension_numbers<[1], [0], [0], [1], [0, 0, 1, 1], [], []>} : vector<8x32xbf16>, vector<32x64xbf16>, vector<8x64xf32> -> vector<8x64xf32>
    %c0_69 = arith.constant 0 : index
    %c0_70 = arith.constant 0 : index
    %154 = vector.load %arg14[%c0_69, %c0_70] : memref<1x64xf32, #tpu.memory_space<vmem>>, vector<1x64xf32>
    %155 = vector.shape_cast %154 : vector<1x64xf32> to vector<64xf32>
    %156 = vector.shape_cast %155 : vector<64xf32> to vector<1x64xf32>
    %157 = vector.broadcast %156 : vector<1x64xf32> to vector<8x64xf32>
    %158 = arith.addf %153, %157 : vector<8x64xf32>
    %cst_71 = arith.constant 0.000000e+00 : f32
    %159 = vector.broadcast %cst_71 : f32 to vector<8x64xf32>
    %160 = arith.maximumf %158, %159 : vector<8x64xf32>
    %161 = arith.truncf %160 : vector<8x64xf32> to vector<8x64xbf16>
    %c0_72 = arith.constant 0 : index
    %c0_73 = arith.constant 0 : index
    %162 = vector.load %arg15[%c0_72, %c0_73] : memref<64x32xbf16, #tpu.memory_space<vmem>>, vector<64x32xbf16>
    %cst_74 = arith.constant dense<0.000000e+00> : vector<8x32xf32>
    %163 = tpu.matmul %161, %162, %cst_74 {dimension_numbers = #tpu.dot_dimension_numbers<[1], [0], [0], [1], [0, 0, 1, 1], [], []>} : vector<8x64xbf16>, vector<64x32xbf16>, vector<8x32xf32> -> vector<8x32xf32>
    %164 = arith.addf %124, %163 : vector<8x32xf32>
    %c0_75 = arith.constant 0 : index
    %c0_76 = arith.constant 0 : index
    %165 = vector.load %arg16[%c0_75, %c0_76] : memref<1x32xf32, #tpu.memory_space<vmem>>, vector<1x32xf32>
    %166 = vector.shape_cast %165 : vector<1x32xf32> to vector<32xf32>
    %167 = vector.shape_cast %166 : vector<32xf32> to vector<1x32xf32>
    %168 = vector.broadcast %167 : vector<1x32xf32> to vector<8x32xf32>
    %169 = arith.addf %164, %168 : vector<8x32xf32>
    %c0_77 = arith.constant 0 : index
    %c0_78 = arith.constant 0 : index
    %c0_79 = arith.constant 0 : index
    %170 = vector.load %arg19[%c0_77, %c0_78, %c0_79] : memref<1x8x32xf32, #tpu.memory_space<vmem>>, vector<1x8x32xf32>
    %171 = vector.shape_cast %170 : vector<1x8x32xf32> to vector<8x32xf32>
    %172 = vector.shape_cast %169 : vector<8x32xf32> to vector<1x8x32xf32>
    tpu.vector_store %arg19[%c0_77, %c0_78, %c0_79], %172 {strides = array<i32>} : memref<1x8x32xf32, #tpu.memory_space<vmem>>, vector<1x8x32xf32>,
    return
  }
  func.func @transform_0(%arg0: i32, %arg1: i32) -> (i32, i32, i32) {
    %c0_i32 = arith.constant 0 : i32
    %c0_i32_0 = arith.constant 0 : i32
    %c0_i32_1 = arith.constant 0 : i32
    return %arg0, %c0_i32, %c0_i32_0 : i32, i32, i32
  }
  func.func @transform_1(%arg0: i32, %arg1: i32) -> (i32, i32, i32) {
    %c0_i32 = arith.constant 0 : i32
    %c0_i32_0 = arith.constant 0 : i32
    %c0_i32_1 = arith.constant 0 : i32
    return %arg0, %c0_i32, %c0_i32_0 : i32, i32, i32
  }
  func.func @transform_2(%arg0: i32, %arg1: i32) -> (i32, i32, i32) {
    %c0_i32 = arith.constant 0 : i32
    %c0_i32_0 = arith.constant 0 : i32
    %c0_i32_1 = arith.constant 0 : i32
    return %arg0, %c0_i32, %c0_i32_0 : i32, i32, i32
  }
  func.func @transform_3(%arg0: i32, %arg1: i32) -> (i32, i32) {
    %c0_i32 = arith.constant 0 : i32
    %c0_i32_0 = arith.constant 0 : i32
    %c0_i32_1 = arith.constant 0 : i32
    return %c0_i32, %c0_i32_0 : i32, i32
  }
  func.func @transform_4(%arg0: i32, %arg1: i32) -> (i32, i32) {
    %c0_i32 = arith.constant 0 : i32
    %c0_i32_0 = arith.constant 0 : i32
    %c0_i32_1 = arith.constant 0 : i32
    return %c0_i32, %c0_i32_0 : i32, i32
  }
  func.func @transform_5(%arg0: i32, %arg1: i32) -> (i32, i32) {
    %c0_i32 = arith.constant 0 : i32
    %c0_i32_0 = arith.constant 0 : i32
    %c0_i32_1 = arith.constant 0 : i32
    return %c0_i32, %c0_i32_0 : i32, i32
  }
  func.func @transform_6(%arg0: i32, %arg1: i32) -> (i32, i32) {
    %c0_i32 = arith.constant 0 : i32
    %c0_i32_0 = arith.constant 0 : i32
    %c0_i32_1 = arith.constant 0 : i32
    return %c0_i32, %c0_i32_0 : i32, i32
  }
  func.func @transform_7(%arg0: i32, %arg1: i32) -> (i32, i32) {
    %c0_i32 = arith.constant 0 : i32
    %c0_i32_0 = arith.constant 0 : i32
    %c0_i32_1 = arith.constant 0 : i32
    return %c0_i32, %c0_i32_0 : i32, i32
  }
  func.func @transform_8(%arg0: i32, %arg1: i32) -> (i32, i32) {
    %c0_i32 = arith.constant 0 : i32
    %c0_i32_0 = arith.constant 0 : i32
    %c0_i32_1 = arith.constant 0 : i32
    return %c0_i32, %c0_i32_0 : i32, i32
  }
  func.func @transform_9(%arg0: i32, %arg1: i32) -> (i32, i32) {
    %c0_i32 = arith.constant 0 : i32
    %c0_i32_0 = arith.constant 0 : i32
    %c0_i32_1 = arith.constant 0 : i32
    return %c0_i32, %c0_i32_0 : i32, i32
  }
  func.func @transform_10(%arg0: i32, %arg1: i32) -> (i32, i32) {
    %c0_i32 = arith.constant 0 : i32
    %c0_i32_0 = arith.constant 0 : i32
    %c0_i32_1 = arith.constant 0 : i32
    return %c0_i32, %c0_i32_0 : i32, i32
  }
  func.func @transform_11(%arg0: i32, %arg1: i32) -> (i32, i32) {
    %c0_i32 = arith.constant 0 : i32
    %c0_i32_0 = arith.constant 0 : i32
    %c0_i32_1 = arith.constant 0 : i32
    return %c0_i32, %c0_i32_0 : i32, i32
  }
  func.func @transform_12(%arg0: i32, %arg1: i32) -> (i32, i32) {
    %c0_i32 = arith.constant 0 : i32
    %c0_i32_0 = arith.constant 0 : i32
    %c0_i32_1 = arith.constant 0 : i32
    return %c0_i32, %c0_i32_0 : i32, i32
  }
  func.func @transform_13(%arg0: i32, %arg1: i32) -> (i32, i32) {
    %c0_i32 = arith.constant 0 : i32
    %c0_i32_0 = arith.constant 0 : i32
    %c0_i32_1 = arith.constant 0 : i32
    return %c0_i32, %c0_i32_0 : i32, i32
  }
  func.func @transform_14(%arg0: i32, %arg1: i32) -> (i32, i32) {
    %c0_i32 = arith.constant 0 : i32
    %c0_i32_0 = arith.constant 0 : i32
    %c0_i32_1 = arith.constant 0 : i32
    return %c0_i32, %c0_i32_0 : i32, i32
  }
  func.func @transform_15(%arg0: i32, %arg1: i32) -> (i32, i32) {
    %c0_i32 = arith.constant 0 : i32
    %c0_i32_0 = arith.constant 0 : i32
    %c0_i32_1 = arith.constant 0 : i32
    return %c0_i32, %c0_i32_0 : i32, i32
  }
  func.func @transform_16(%arg0: i32, %arg1: i32) -> (i32, i32) {
    %c0_i32 = arith.constant 0 : i32
    %c0_i32_0 = arith.constant 0 : i32
    %c0_i32_1 = arith.constant 0 : i32
    return %c0_i32, %c0_i32_0 : i32, i32
  }
  func.func @transform_17(%arg0: i32, %arg1: i32) -> (i32, i32, i32) {
    %c0_i32 = arith.constant 0 : i32
    %c0_i32_0 = arith.constant 0 : i32
    return %arg0, %arg1, %c0_i32 : i32, i32, i32
  }
}

module attributes {stable_mosaic.version = 11 : i64} {
  func.func @_layer_kernel(%arg0: i32, %arg1: i32, %arg2: memref<1x8x32xf32, #tpu.memory_space<vmem>>, %arg3: memref<1x8x3xf32, #tpu.memory_space<vmem>>, %arg4: memref<1x1x8xf32, #tpu.memory_space<vmem>>, %arg5: memref<1x32xf32, #tpu.memory_space<vmem>>, %arg6: memref<1x32xf32, #tpu.memory_space<vmem>>, %arg7: memref<32x96xbf16, #tpu.memory_space<vmem>>, %arg8: memref<1x96xf32, #tpu.memory_space<vmem>>, %arg9: memref<32x32xbf16, #tpu.memory_space<vmem>>, %arg10: memref<1x32xf32, #tpu.memory_space<vmem>>, %arg11: memref<1x32xf32, #tpu.memory_space<vmem>>, %arg12: memref<1x32xf32, #tpu.memory_space<vmem>>, %arg13: memref<32x64xbf16, #tpu.memory_space<vmem>>, %arg14: memref<1x64xf32, #tpu.memory_space<vmem>>, %arg15: memref<64x32xbf16, #tpu.memory_space<vmem>>, %arg16: memref<1x32xf32, #tpu.memory_space<vmem>>, %arg17: memref<1x32xf32, #tpu.memory_space<vmem>>, %arg18: memref<1x32xf32, #tpu.memory_space<vmem>>, %arg19: memref<1x8x32xf32, #tpu.memory_space<vmem>>, %arg20: memref<8x96xbf16, #tpu.memory_space<vmem>>, %arg21: memref<8x32xf32, #tpu.memory_space<vmem>>) attributes {dimension_semantics = [#tpu.dimension_semantics<parallel>, #tpu.dimension_semantics<arbitrary>], iteration_bounds = array<i64: 2, 1>, scalar_prefetch = 0 : i64, scratch_operands = 2 : i64, tpu.core_type = #tpu.core_type<tc>, window_params = [{transform_indices = @transform_0, window_bounds = array<i64: 1, 8, 32>}, {transform_indices = @transform_1, window_bounds = array<i64: 1, 8, 3>}, {transform_indices = @transform_2, window_bounds = array<i64: 1, 1, 8>}, {pipeline_mode = #tpu.pipeline_mode<synchronous>, transform_indices = @transform_3, window_bounds = array<i64: 1, 32>}, {pipeline_mode = #tpu.pipeline_mode<synchronous>, transform_indices = @transform_4, window_bounds = array<i64: 1, 32>}, {pipeline_mode = #tpu.pipeline_mode<synchronous>, transform_indices = @transform_5, window_bounds = array<i64: 32, 96>}, {pipeline_mode = #tpu.pipeline_mode<synchronous>, transform_indices = @transform_6, window_bounds = array<i64: 1, 96>}, {pipeline_mode = #tpu.pipeline_mode<synchronous>, transform_indices = @transform_7, window_bounds = array<i64: 32, 32>}, {pipeline_mode = #tpu.pipeline_mode<synchronous>, transform_indices = @transform_8, window_bounds = array<i64: 1, 32>}, {pipeline_mode = #tpu.pipeline_mode<synchronous>, transform_indices = @transform_9, window_bounds = array<i64: 1, 32>}, {pipeline_mode = #tpu.pipeline_mode<synchronous>, transform_indices = @transform_10, window_bounds = array<i64: 1, 32>}, {pipeline_mode = #tpu.pipeline_mode<synchronous>, transform_indices = @transform_11, window_bounds = array<i64: 32, 64>}, {pipeline_mode = #tpu.pipeline_mode<synchronous>, transform_indices = @transform_12, window_bounds = array<i64: 1, 64>}, {pipeline_mode = #tpu.pipeline_mode<synchronous>, transform_indices = @transform_13, window_bounds = array<i64: 64, 32>}, {pipeline_mode = #tpu.pipeline_mode<synchronous>, transform_indices = @transform_14, window_bounds = array<i64: 1, 32>}, {pipeline_mode = #tpu.pipeline_mode<synchronous>, transform_indices = @transform_15, window_bounds = array<i64: 1, 32>}, {pipeline_mode = #tpu.pipeline_mode<synchronous>, transform_indices = @transform_16, window_bounds = array<i64: 1, 32>}, {transform_indices = @transform_17, window_bounds = array<i64: 1, 8, 32>}]} {
    %c0_i32 = arith.constant 0 : i32
    %0 = arith.cmpi eq, %arg1, %c0_i32 : i32
    %1 = arith.extui %0 : i1 to i32
    %cst = arith.constant 0.353553385 : f32
    %c0_i32_0 = arith.constant 0 : i32
    %2 = arith.cmpi ne, %1, %c0_i32_0 : i32
    scf.if %2 {
      %c0_89 = arith.constant 0 : index
      %c0_90 = arith.constant 0 : index
      %c0_91 = arith.constant 0 : index
      %199 = vector.load %arg2[%c0_89, %c0_90, %c0_91] : memref<1x8x32xf32, #tpu.memory_space<vmem>>, vector<1x8x32xf32>
      %200 = vector.shape_cast %199 : vector<1x8x32xf32> to vector<8x32xf32>
      %c0_92 = arith.constant 0 : index
      %c0_93 = arith.constant 0 : index
      %201 = vector.load %arg5[%c0_92, %c0_93] : memref<1x32xf32, #tpu.memory_space<vmem>>, vector<1x32xf32>
      %202 = vector.shape_cast %201 : vector<1x32xf32> to vector<32xf32>
      %c0_94 = arith.constant 0 : index
      %c0_95 = arith.constant 0 : index
      %203 = vector.load %arg6[%c0_94, %c0_95] : memref<1x32xf32, #tpu.memory_space<vmem>>, vector<1x32xf32>
      %204 = vector.shape_cast %203 : vector<1x32xf32> to vector<32xf32>
      %cst_96 = arith.constant dense<0.000000e+00> : vector<8xf32>
      %205 = vector.multi_reduction <add>, %200, %cst_96 [1] : vector<8x32xf32> to vector<8xf32>
      %206 = vector.shape_cast %205 : vector<8xf32> to vector<8x1xf32>
      %cst_97 = arith.constant 3.200000e+01 : f32
      %207 = vector.broadcast %cst_97 : f32 to vector<8x1xf32>
      %208 = arith.divf %206, %207 : vector<8x1xf32>
      %209 = vector.broadcast %208 : vector<8x1xf32> to vector<8x32xf32>
      %210 = arith.subf %200, %209 : vector<8x32xf32>
      %211 = arith.mulf %210, %210 : vector<8x32xf32>
      %cst_98 = arith.constant dense<0.000000e+00> : vector<8xf32>
      %212 = vector.multi_reduction <add>, %211, %cst_98 [1] : vector<8x32xf32> to vector<8xf32>
      %213 = vector.shape_cast %212 : vector<8xf32> to vector<8x1xf32>
      %cst_99 = arith.constant 3.100000e+01 : f32
      %214 = vector.broadcast %cst_99 : f32 to vector<8x1xf32>
      %215 = arith.divf %213, %214 : vector<8x1xf32>
      %216 = vector.shape_cast %202 : vector<32xf32> to vector<1x32xf32>
      %217 = vector.broadcast %216 : vector<1x32xf32> to vector<8x32xf32>
      %218 = arith.mulf %217, %210 : vector<8x32xf32>
      %219 = math.sqrt %215 : vector<8x1xf32>
      %cst_100 = arith.constant 9.99999997E-7 : f32
      %220 = vector.broadcast %cst_100 : f32 to vector<8x1xf32>
      %221 = arith.addf %219, %220 : vector<8x1xf32>
      %222 = vector.broadcast %221 : vector<8x1xf32> to vector<8x32xf32>
      %223 = arith.divf %218, %222 : vector<8x32xf32>
      %224 = vector.shape_cast %204 : vector<32xf32> to vector<1x32xf32>
      %225 = vector.broadcast %224 : vector<1x32xf32> to vector<8x32xf32>
      %226 = arith.addf %223, %225 : vector<8x32xf32>
      %227 = arith.truncf %226 : vector<8x32xf32> to vector<8x32xbf16>
      %c0_101 = arith.constant 0 : index
      %c0_102 = arith.constant 0 : index
      %228 = vector.load %arg7[%c0_101, %c0_102] : memref<32x96xbf16, #tpu.memory_space<vmem>>, vector<32x96xbf16>
      %cst_103 = arith.constant dense<0.000000e+00> : vector<8x96xf32>
      %229 = tpu.matmul %227, %228, %cst_103 {dimension_numbers = #tpu.dot_dimension_numbers<[1], [0], [0], [1], [0, 0, 1, 1], [], []>} : vector<8x32xbf16>, vector<32x96xbf16>, vector<8x96xf32> -> vector<8x96xf32>
      %c0_104 = arith.constant 0 : index
      %c0_105 = arith.constant 0 : index
      %230 = vector.load %arg8[%c0_104, %c0_105] : memref<1x96xf32, #tpu.memory_space<vmem>>, vector<1x96xf32>
      %231 = vector.shape_cast %230 : vector<1x96xf32> to vector<96xf32>
      %232 = vector.shape_cast %231 : vector<96xf32> to vector<1x96xf32>
      %233 = vector.broadcast %232 : vector<1x96xf32> to vector<8x96xf32>
      %234 = arith.addf %229, %233 : vector<8x96xf32>
      %235 = vector.extract_strided_slice %234 {offsets = [0, 0], sizes = [8, 32], strides = [1, 1]} : vector<8x96xf32> to vector<8x32xf32>
      %236 = vector.broadcast %cst : f32 to vector<8x32xf32>
      %237 = arith.mulf %235, %236 : vector<8x32xf32>
      %238 = arith.truncf %237 : vector<8x32xf32> to vector<8x32xbf16>
      %c0_106 = arith.constant 0 : index
      %c0_107 = arith.constant 0 : index
      %239 = vector.load %arg20[%c0_106, %c0_107] : memref<8x96xbf16, #tpu.memory_space<vmem>>, vector<8x32xbf16>
      tpu.vector_store %arg20[%c0_106, %c0_107], %238 {strides = array<i32>} : memref<8x96xbf16, #tpu.memory_space<vmem>>, vector<8x32xbf16>,
      %240 = vector.extract_strided_slice %234 {offsets = [0, 32], sizes = [8, 64], strides = [1, 1]} : vector<8x96xf32> to vector<8x64xf32>
      %241 = arith.truncf %240 : vector<8x64xf32> to vector<8x64xbf16>
      %c0_108 = arith.constant 0 : index
      %c32_109 = arith.constant 32 : index
      %242 = vector.load %arg20[%c0_108, %c32_109] : memref<8x96xbf16, #tpu.memory_space<vmem>>, vector<8x64xbf16>
      tpu.vector_store %arg20[%c0_108, %c32_109], %241 {strides = array<i32>} : memref<8x96xbf16, #tpu.memory_space<vmem>>, vector<8x64xbf16>,
    } else {
    }
    %c8_i32 = arith.constant 8 : i32
    %3 = arith.muli %arg1, %c8_i32 : i32
    %4 = tpu.assume_multiple %3, 8 : i32
    %c0 = arith.constant 0 : index
    %5 = arith.index_cast %4 : i32 to index
    %c0_1 = arith.constant 0 : index
    %6 = vector.load %arg2[%c0, %5, %c0_1] : memref<1x8x32xf32, #tpu.memory_space<vmem>>, vector<1x8x32xf32>
    %7 = vector.shape_cast %6 : vector<1x8x32xf32> to vector<8x32xf32>
    %c0_2 = arith.constant 0 : index
    %8 = arith.index_cast %4 : i32 to index
    %c0_3 = arith.constant 0 : index
    %9 = vector.load %arg3[%c0_2, %8, %c0_3] : memref<1x8x3xf32, #tpu.memory_space<vmem>>, vector<1x8x3xf32>
    %10 = vector.shape_cast %9 : vector<1x8x3xf32> to vector<8x3xf32>
    %c0_4 = arith.constant 0 : index
    %c0_5 = arith.constant 0 : index
    %c0_6 = arith.constant 0 : index
    %11 = vector.load %arg3[%c0_4, %c0_5, %c0_6] : memref<1x8x3xf32, #tpu.memory_space<vmem>>, vector<1x8x3xf32>
    %12 = vector.shape_cast %11 : vector<1x8x3xf32> to vector<8x3xf32>
    %13 = arith.mulf %10, %10 : vector<8x3xf32>
    %cst_7 = arith.constant dense<0.000000e+00> : vector<8xf32>
    %14 = vector.multi_reduction <add>, %13, %cst_7 [1] : vector<8x3xf32> to vector<8xf32>
    %15 = vector.shape_cast %14 : vector<8xf32> to vector<8x1xf32>
    %16 = arith.mulf %12, %12 : vector<8x3xf32>
    %cst_8 = arith.constant dense<0.000000e+00> : vector<8xf32>
    %17 = vector.multi_reduction <add>, %16, %cst_8 [1] : vector<8x3xf32> to vector<8xf32>
    %18 = vector.shape_cast %17 : vector<8xf32> to vector<8x1xf32>
    %cst_9 = arith.constant dense<0.000000e+00> : vector<8x8xf32>
    %19 = tpu.matmul %10, %12, %cst_9 {dimension_numbers = #tpu.dot_dimension_numbers<[1], [1], [0], [0], [0, 0, 1, 0], [], []>} : vector<8x3xf32>, vector<8x3xf32>, vector<8x8xf32> -> vector<8x8xf32>
    %20 = tpu.transpose %18, [1, 0] : vector<8x1xf32> -> vector<1x8xf32>
    %21 = vector.broadcast %15 : vector<8x1xf32> to vector<8x8xf32>
    %22 = vector.broadcast %20 : vector<1x8xf32> to vector<8x8xf32>
    %23 = arith.addf %21, %22 : vector<8x8xf32>
    %cst_10 = arith.constant 2.000000e+00 : f32
    %24 = vector.broadcast %cst_10 : f32 to vector<8x8xf32>
    %25 = arith.mulf %24, %19 : vector<8x8xf32>
    %26 = arith.subf %23, %25 : vector<8x8xf32>
    %cst_11 = arith.constant 0.000000e+00 : f32
    %27 = vector.broadcast %cst_11 : f32 to vector<8x8xf32>
    %28 = arith.maximumf %26, %27 : vector<8x8xf32>
    %29 = math.sqrt %28 : vector<8x8xf32>
    %c0_12 = arith.constant 0 : index
    %c0_13 = arith.constant 0 : index
    %c0_14 = arith.constant 0 : index
    %30 = vector.load %arg4[%c0_12, %c0_13, %c0_14] : memref<1x1x8xf32, #tpu.memory_space<vmem>>, vector<1x1x8xf32>
    %31 = vector.shape_cast %30 : vector<1x1x8xf32> to vector<8xf32>
    %cst_15 = arith.constant 0.000000e+00 : f32
    %32 = vector.broadcast %cst_15 : f32 to vector<8xf32>
    %33 = arith.cmpf ogt, %31, %32 : vector<8xf32>
    %34 = vector.shape_cast %33 : vector<8xi1> to vector<1x8xi1>
    %cst_16 = arith.constant -1.000000e+09 : f32
    %35 = vector.shape_cast %34 : vector<1x8xi1> to vector<1x8xi1>
    %36 = vector.broadcast %35 : vector<1x8xi1> to vector<8x8xi1>
    %37 = vector.broadcast %cst_16 : f32 to vector<8x8xf32>
    %38 = arith.select %36, %29, %37 : vector<8x8xi1>, vector<8x8xf32>
    %39 = arith.index_cast %4 : i32 to index
    %c0_17 = arith.constant 0 : index
    %40 = vector.load %arg20[%39, %c0_17] : memref<8x96xbf16, #tpu.memory_space<vmem>>, vector<8x8xbf16>
    %c0_18 = arith.constant 0 : index
    %c32 = arith.constant 32 : index
    %41 = vector.load %arg20[%c0_18, %c32] : memref<8x96xbf16, #tpu.memory_space<vmem>>, vector<8x8xbf16>
    %c0_19 = arith.constant 0 : index
    %c64 = arith.constant 64 : index
    %42 = vector.load %arg20[%c0_19, %c64] : memref<8x96xbf16, #tpu.memory_space<vmem>>, vector<8x8xbf16>
    %cst_20 = arith.constant dense<0.000000e+00> : vector<8x8xf32>
    %43 = tpu.matmul %40, %41, %cst_20 {dimension_numbers = #tpu.dot_dimension_numbers<[1], [1], [0], [0], [0, 0, 1, 0], [], []>} : vector<8x8xbf16>, vector<8x8xbf16>, vector<8x8xf32> -> vector<8x8xf32>
    %44 = arith.addf %43, %38 : vector<8x8xf32>
    %cst_21 = arith.constant dense<0xFF800000> : vector<8xf32>
    %45 = vector.multi_reduction <maximumf>, %44, %cst_21 [1] : vector<8x8xf32> to vector<8xf32>
    %46 = vector.shape_cast %45 : vector<8xf32> to vector<8x1xf32>
    %47 = vector.broadcast %46 : vector<8x1xf32> to vector<8x8xf32>
    %48 = arith.subf %44, %47 : vector<8x8xf32>
    %49 = math.exp %48 : vector<8x8xf32>
    %cst_22 = arith.constant dense<0.000000e+00> : vector<8xf32>
    %50 = vector.multi_reduction <add>, %49, %cst_22 [1] : vector<8x8xf32> to vector<8xf32>
    %51 = vector.shape_cast %50 : vector<8xf32> to vector<8x1xf32>
    %52 = tpu.reciprocal %51 {approx = true} : vector<8x1xf32> -> vector<8x1xf32>
    %53 = vector.broadcast %52 : vector<8x1xf32> to vector<8x8xf32>
    %54 = arith.mulf %49, %53 : vector<8x8xf32>
    %55 = arith.truncf %54 : vector<8x8xf32> to vector<8x8xbf16>
    %cst_23 = arith.constant dense<0.000000e+00> : vector<8x8xf32>
    %56 = tpu.matmul %55, %42, %cst_23 {dimension_numbers = #tpu.dot_dimension_numbers<[1], [0], [0], [1], [0, 0, 1, 1], [], []>} : vector<8x8xbf16>, vector<8x8xbf16>, vector<8x8xf32> -> vector<8x8xf32>
    %c0_24 = arith.constant 0 : index
    %c0_25 = arith.constant 0 : index
    %57 = vector.load %arg21[%c0_24, %c0_25] : memref<8x32xf32, #tpu.memory_space<vmem>>, vector<8x8xf32>
    tpu.vector_store %arg21[%c0_24, %c0_25], %56 {strides = array<i32>} : memref<8x32xf32, #tpu.memory_space<vmem>>, vector<8x8xf32>,
    %58 = arith.index_cast %4 : i32 to index
    %c8 = arith.constant 8 : index
    %59 = vector.load %arg20[%58, %c8] : memref<8x96xbf16, #tpu.memory_space<vmem>>, vector<8x8xbf16>
    %c0_26 = arith.constant 0 : index
    %c40 = arith.constant 40 : index
    %60 = vector.load %arg20[%c0_26, %c40] : memref<8x96xbf16, #tpu.memory_space<vmem>>, vector<8x8xbf16>
    %c0_27 = arith.constant 0 : index
    %c72 = arith.constant 72 : index
    %61 = vector.load %arg20[%c0_27, %c72] : memref<8x96xbf16, #tpu.memory_space<vmem>>, vector<8x8xbf16>
    %cst_28 = arith.constant dense<0.000000e+00> : vector<8x8xf32>
    %62 = tpu.matmul %59, %60, %cst_28 {dimension_numbers = #tpu.dot_dimension_numbers<[1], [1], [0], [0], [0, 0, 1, 0], [], []>} : vector<8x8xbf16>, vector<8x8xbf16>, vector<8x8xf32> -> vector<8x8xf32>
    %63 = arith.addf %62, %38 : vector<8x8xf32>
    %cst_29 = arith.constant dense<0xFF800000> : vector<8xf32>
    %64 = vector.multi_reduction <maximumf>, %63, %cst_29 [1] : vector<8x8xf32> to vector<8xf32>
    %65 = vector.shape_cast %64 : vector<8xf32> to vector<8x1xf32>
    %66 = vector.broadcast %65 : vector<8x1xf32> to vector<8x8xf32>
    %67 = arith.subf %63, %66 : vector<8x8xf32>
    %68 = math.exp %67 : vector<8x8xf32>
    %cst_30 = arith.constant dense<0.000000e+00> : vector<8xf32>
    %69 = vector.multi_reduction <add>, %68, %cst_30 [1] : vector<8x8xf32> to vector<8xf32>
    %70 = vector.shape_cast %69 : vector<8xf32> to vector<8x1xf32>
    %71 = tpu.reciprocal %70 {approx = true} : vector<8x1xf32> -> vector<8x1xf32>
    %72 = vector.broadcast %71 : vector<8x1xf32> to vector<8x8xf32>
    %73 = arith.mulf %68, %72 : vector<8x8xf32>
    %74 = arith.truncf %73 : vector<8x8xf32> to vector<8x8xbf16>
    %cst_31 = arith.constant dense<0.000000e+00> : vector<8x8xf32>
    %75 = tpu.matmul %74, %61, %cst_31 {dimension_numbers = #tpu.dot_dimension_numbers<[1], [0], [0], [1], [0, 0, 1, 1], [], []>} : vector<8x8xbf16>, vector<8x8xbf16>, vector<8x8xf32> -> vector<8x8xf32>
    %c0_32 = arith.constant 0 : index
    %c8_33 = arith.constant 8 : index
    %76 = vector.load %arg21[%c0_32, %c8_33] : memref<8x32xf32, #tpu.memory_space<vmem>>, vector<8x8xf32>
    tpu.vector_store %arg21[%c0_32, %c8_33], %75 {strides = array<i32>} : memref<8x32xf32, #tpu.memory_space<vmem>>, vector<8x8xf32>,
    %77 = arith.index_cast %4 : i32 to index
    %c16 = arith.constant 16 : index
    %78 = vector.load %arg20[%77, %c16] : memref<8x96xbf16, #tpu.memory_space<vmem>>, vector<8x8xbf16>
    %c0_34 = arith.constant 0 : index
    %c48 = arith.constant 48 : index
    %79 = vector.load %arg20[%c0_34, %c48] : memref<8x96xbf16, #tpu.memory_space<vmem>>, vector<8x8xbf16>
    %c0_35 = arith.constant 0 : index
    %c80 = arith.constant 80 : index
    %80 = vector.load %arg20[%c0_35, %c80] : memref<8x96xbf16, #tpu.memory_space<vmem>>, vector<8x8xbf16>
    %cst_36 = arith.constant dense<0.000000e+00> : vector<8x8xf32>
    %81 = tpu.matmul %78, %79, %cst_36 {dimension_numbers = #tpu.dot_dimension_numbers<[1], [1], [0], [0], [0, 0, 1, 0], [], []>} : vector<8x8xbf16>, vector<8x8xbf16>, vector<8x8xf32> -> vector<8x8xf32>
    %82 = arith.addf %81, %38 : vector<8x8xf32>
    %cst_37 = arith.constant dense<0xFF800000> : vector<8xf32>
    %83 = vector.multi_reduction <maximumf>, %82, %cst_37 [1] : vector<8x8xf32> to vector<8xf32>
    %84 = vector.shape_cast %83 : vector<8xf32> to vector<8x1xf32>
    %85 = vector.broadcast %84 : vector<8x1xf32> to vector<8x8xf32>
    %86 = arith.subf %82, %85 : vector<8x8xf32>
    %87 = math.exp %86 : vector<8x8xf32>
    %cst_38 = arith.constant dense<0.000000e+00> : vector<8xf32>
    %88 = vector.multi_reduction <add>, %87, %cst_38 [1] : vector<8x8xf32> to vector<8xf32>
    %89 = vector.shape_cast %88 : vector<8xf32> to vector<8x1xf32>
    %90 = tpu.reciprocal %89 {approx = true} : vector<8x1xf32> -> vector<8x1xf32>
    %91 = vector.broadcast %90 : vector<8x1xf32> to vector<8x8xf32>
    %92 = arith.mulf %87, %91 : vector<8x8xf32>
    %93 = arith.truncf %92 : vector<8x8xf32> to vector<8x8xbf16>
    %cst_39 = arith.constant dense<0.000000e+00> : vector<8x8xf32>
    %94 = tpu.matmul %93, %80, %cst_39 {dimension_numbers = #tpu.dot_dimension_numbers<[1], [0], [0], [1], [0, 0, 1, 1], [], []>} : vector<8x8xbf16>, vector<8x8xbf16>, vector<8x8xf32> -> vector<8x8xf32>
    %c0_40 = arith.constant 0 : index
    %c16_41 = arith.constant 16 : index
    %95 = vector.load %arg21[%c0_40, %c16_41] : memref<8x32xf32, #tpu.memory_space<vmem>>, vector<8x8xf32>
    tpu.vector_store %arg21[%c0_40, %c16_41], %94 {strides = array<i32>} : memref<8x32xf32, #tpu.memory_space<vmem>>, vector<8x8xf32>,
    %96 = arith.index_cast %4 : i32 to index
    %c24 = arith.constant 24 : index
    %97 = vector.load %arg20[%96, %c24] : memref<8x96xbf16, #tpu.memory_space<vmem>>, vector<8x8xbf16>
    %c0_42 = arith.constant 0 : index
    %c56 = arith.constant 56 : index
    %98 = vector.load %arg20[%c0_42, %c56] : memref<8x96xbf16, #tpu.memory_space<vmem>>, vector<8x8xbf16>
    %c0_43 = arith.constant 0 : index
    %c88 = arith.constant 88 : index
    %99 = vector.load %arg20[%c0_43, %c88] : memref<8x96xbf16, #tpu.memory_space<vmem>>, vector<8x8xbf16>
    %cst_44 = arith.constant dense<0.000000e+00> : vector<8x8xf32>
    %100 = tpu.matmul %97, %98, %cst_44 {dimension_numbers = #tpu.dot_dimension_numbers<[1], [1], [0], [0], [0, 0, 1, 0], [], []>} : vector<8x8xbf16>, vector<8x8xbf16>, vector<8x8xf32> -> vector<8x8xf32>
    %101 = arith.addf %100, %38 : vector<8x8xf32>
    %cst_45 = arith.constant dense<0xFF800000> : vector<8xf32>
    %102 = vector.multi_reduction <maximumf>, %101, %cst_45 [1] : vector<8x8xf32> to vector<8xf32>
    %103 = vector.shape_cast %102 : vector<8xf32> to vector<8x1xf32>
    %104 = vector.broadcast %103 : vector<8x1xf32> to vector<8x8xf32>
    %105 = arith.subf %101, %104 : vector<8x8xf32>
    %106 = math.exp %105 : vector<8x8xf32>
    %cst_46 = arith.constant dense<0.000000e+00> : vector<8xf32>
    %107 = vector.multi_reduction <add>, %106, %cst_46 [1] : vector<8x8xf32> to vector<8xf32>
    %108 = vector.shape_cast %107 : vector<8xf32> to vector<8x1xf32>
    %109 = tpu.reciprocal %108 {approx = true} : vector<8x1xf32> -> vector<8x1xf32>
    %110 = vector.broadcast %109 : vector<8x1xf32> to vector<8x8xf32>
    %111 = arith.mulf %106, %110 : vector<8x8xf32>
    %112 = arith.truncf %111 : vector<8x8xf32> to vector<8x8xbf16>
    %cst_47 = arith.constant dense<0.000000e+00> : vector<8x8xf32>
    %113 = tpu.matmul %112, %99, %cst_47 {dimension_numbers = #tpu.dot_dimension_numbers<[1], [0], [0], [1], [0, 0, 1, 1], [], []>} : vector<8x8xbf16>, vector<8x8xbf16>, vector<8x8xf32> -> vector<8x8xf32>
    %c0_48 = arith.constant 0 : index
    %c24_49 = arith.constant 24 : index
    %114 = vector.load %arg21[%c0_48, %c24_49] : memref<8x32xf32, #tpu.memory_space<vmem>>, vector<8x8xf32>
    tpu.vector_store %arg21[%c0_48, %c24_49], %113 {strides = array<i32>} : memref<8x32xf32, #tpu.memory_space<vmem>>, vector<8x8xf32>,
    %c0_50 = arith.constant 0 : index
    %c0_51 = arith.constant 0 : index
    %115 = vector.load %arg21[%c0_50, %c0_51] : memref<8x32xf32, #tpu.memory_space<vmem>>, vector<8x32xf32>
    %116 = arith.truncf %115 : vector<8x32xf32> to vector<8x32xbf16>
    %c0_52 = arith.constant 0 : index
    %c0_53 = arith.constant 0 : index
    %117 = vector.load %arg9[%c0_52, %c0_53] : memref<32x32xbf16, #tpu.memory_space<vmem>>, vector<32x32xbf16>
    %cst_54 = arith.constant dense<0.000000e+00> : vector<8x32xf32>
    %118 = tpu.matmul %116, %117, %cst_54 {dimension_numbers = #tpu.dot_dimension_numbers<[1], [0], [0], [1], [0, 0, 1, 1], [], []>} : vector<8x32xbf16>, vector<32x32xbf16>, vector<8x32xf32> -> vector<8x32xf32>
    %119 = arith.addf %7, %118 : vector<8x32xf32>
    %c0_55 = arith.constant 0 : index
    %c0_56 = arith.constant 0 : index
    %120 = vector.load %arg10[%c0_55, %c0_56] : memref<1x32xf32, #tpu.memory_space<vmem>>, vector<1x32xf32>
    %121 = vector.shape_cast %120 : vector<1x32xf32> to vector<32xf32>
    %122 = vector.shape_cast %121 : vector<32xf32> to vector<1x32xf32>
    %123 = vector.broadcast %122 : vector<1x32xf32> to vector<8x32xf32>
    %124 = arith.addf %119, %123 : vector<8x32xf32>
    %c0_57 = arith.constant 0 : index
    %c0_58 = arith.constant 0 : index
    %125 = vector.load %arg11[%c0_57, %c0_58] : memref<1x32xf32, #tpu.memory_space<vmem>>, vector<1x32xf32>
    %126 = vector.shape_cast %125 : vector<1x32xf32> to vector<32xf32>
    %c0_59 = arith.constant 0 : index
    %c0_60 = arith.constant 0 : index
    %127 = vector.load %arg12[%c0_59, %c0_60] : memref<1x32xf32, #tpu.memory_space<vmem>>, vector<1x32xf32>
    %128 = vector.shape_cast %127 : vector<1x32xf32> to vector<32xf32>
    %cst_61 = arith.constant dense<0.000000e+00> : vector<8xf32>
    %129 = vector.multi_reduction <add>, %124, %cst_61 [1] : vector<8x32xf32> to vector<8xf32>
    %130 = vector.shape_cast %129 : vector<8xf32> to vector<8x1xf32>
    %cst_62 = arith.constant 3.200000e+01 : f32
    %131 = vector.broadcast %cst_62 : f32 to vector<8x1xf32>
    %132 = arith.divf %130, %131 : vector<8x1xf32>
    %133 = vector.broadcast %132 : vector<8x1xf32> to vector<8x32xf32>
    %134 = arith.subf %124, %133 : vector<8x32xf32>
    %135 = arith.mulf %134, %134 : vector<8x32xf32>
    %cst_63 = arith.constant dense<0.000000e+00> : vector<8xf32>
    %136 = vector.multi_reduction <add>, %135, %cst_63 [1] : vector<8x32xf32> to vector<8xf32>
    %137 = vector.shape_cast %136 : vector<8xf32> to vector<8x1xf32>
    %cst_64 = arith.constant 3.100000e+01 : f32
    %138 = vector.broadcast %cst_64 : f32 to vector<8x1xf32>
    %139 = arith.divf %137, %138 : vector<8x1xf32>
    %140 = vector.shape_cast %126 : vector<32xf32> to vector<1x32xf32>
    %141 = vector.broadcast %140 : vector<1x32xf32> to vector<8x32xf32>
    %142 = arith.mulf %141, %134 : vector<8x32xf32>
    %143 = math.sqrt %139 : vector<8x1xf32>
    %cst_65 = arith.constant 9.99999997E-7 : f32
    %144 = vector.broadcast %cst_65 : f32 to vector<8x1xf32>
    %145 = arith.addf %143, %144 : vector<8x1xf32>
    %146 = vector.broadcast %145 : vector<8x1xf32> to vector<8x32xf32>
    %147 = arith.divf %142, %146 : vector<8x32xf32>
    %148 = vector.shape_cast %128 : vector<32xf32> to vector<1x32xf32>
    %149 = vector.broadcast %148 : vector<1x32xf32> to vector<8x32xf32>
    %150 = arith.addf %147, %149 : vector<8x32xf32>
    %151 = arith.truncf %150 : vector<8x32xf32> to vector<8x32xbf16>
    %c0_66 = arith.constant 0 : index
    %c0_67 = arith.constant 0 : index
    %152 = vector.load %arg13[%c0_66, %c0_67] : memref<32x64xbf16, #tpu.memory_space<vmem>>, vector<32x64xbf16>
    %cst_68 = arith.constant dense<0.000000e+00> : vector<8x64xf32>
    %153 = tpu.matmul %151, %152, %cst_68 {dimension_numbers = #tpu.dot_dimension_numbers<[1], [0], [0], [1], [0, 0, 1, 1], [], []>} : vector<8x32xbf16>, vector<32x64xbf16>, vector<8x64xf32> -> vector<8x64xf32>
    %c0_69 = arith.constant 0 : index
    %c0_70 = arith.constant 0 : index
    %154 = vector.load %arg14[%c0_69, %c0_70] : memref<1x64xf32, #tpu.memory_space<vmem>>, vector<1x64xf32>
    %155 = vector.shape_cast %154 : vector<1x64xf32> to vector<64xf32>
    %156 = vector.shape_cast %155 : vector<64xf32> to vector<1x64xf32>
    %157 = vector.broadcast %156 : vector<1x64xf32> to vector<8x64xf32>
    %158 = arith.addf %153, %157 : vector<8x64xf32>
    %cst_71 = arith.constant 0.000000e+00 : f32
    %159 = vector.broadcast %cst_71 : f32 to vector<8x64xf32>
    %160 = arith.maximumf %158, %159 : vector<8x64xf32>
    %161 = arith.truncf %160 : vector<8x64xf32> to vector<8x64xbf16>
    %c0_72 = arith.constant 0 : index
    %c0_73 = arith.constant 0 : index
    %162 = vector.load %arg15[%c0_72, %c0_73] : memref<64x32xbf16, #tpu.memory_space<vmem>>, vector<64x32xbf16>
    %cst_74 = arith.constant dense<0.000000e+00> : vector<8x32xf32>
    %163 = tpu.matmul %161, %162, %cst_74 {dimension_numbers = #tpu.dot_dimension_numbers<[1], [0], [0], [1], [0, 0, 1, 1], [], []>} : vector<8x64xbf16>, vector<64x32xbf16>, vector<8x32xf32> -> vector<8x32xf32>
    %164 = arith.addf %124, %163 : vector<8x32xf32>
    %c0_75 = arith.constant 0 : index
    %c0_76 = arith.constant 0 : index
    %165 = vector.load %arg16[%c0_75, %c0_76] : memref<1x32xf32, #tpu.memory_space<vmem>>, vector<1x32xf32>
    %166 = vector.shape_cast %165 : vector<1x32xf32> to vector<32xf32>
    %167 = vector.shape_cast %166 : vector<32xf32> to vector<1x32xf32>
    %168 = vector.broadcast %167 : vector<1x32xf32> to vector<8x32xf32>
    %169 = arith.addf %164, %168 : vector<8x32xf32>
    %c0_77 = arith.constant 0 : index
    %c0_78 = arith.constant 0 : index
    %170 = vector.load %arg17[%c0_77, %c0_78] : memref<1x32xf32, #tpu.memory_space<vmem>>, vector<1x32xf32>
    %171 = vector.shape_cast %170 : vector<1x32xf32> to vector<32xf32>
    %c0_79 = arith.constant 0 : index
    %c0_80 = arith.constant 0 : index
    %172 = vector.load %arg18[%c0_79, %c0_80] : memref<1x32xf32, #tpu.memory_space<vmem>>, vector<1x32xf32>
    %173 = vector.shape_cast %172 : vector<1x32xf32> to vector<32xf32>
    %cst_81 = arith.constant dense<0.000000e+00> : vector<8xf32>
    %174 = vector.multi_reduction <add>, %169, %cst_81 [1] : vector<8x32xf32> to vector<8xf32>
    %175 = vector.shape_cast %174 : vector<8xf32> to vector<8x1xf32>
    %cst_82 = arith.constant 3.200000e+01 : f32
    %176 = vector.broadcast %cst_82 : f32 to vector<8x1xf32>
    %177 = arith.divf %175, %176 : vector<8x1xf32>
    %178 = vector.broadcast %177 : vector<8x1xf32> to vector<8x32xf32>
    %179 = arith.subf %169, %178 : vector<8x32xf32>
    %180 = arith.mulf %179, %179 : vector<8x32xf32>
    %cst_83 = arith.constant dense<0.000000e+00> : vector<8xf32>
    %181 = vector.multi_reduction <add>, %180, %cst_83 [1] : vector<8x32xf32> to vector<8xf32>
    %182 = vector.shape_cast %181 : vector<8xf32> to vector<8x1xf32>
    %cst_84 = arith.constant 3.100000e+01 : f32
    %183 = vector.broadcast %cst_84 : f32 to vector<8x1xf32>
    %184 = arith.divf %182, %183 : vector<8x1xf32>
    %185 = vector.shape_cast %171 : vector<32xf32> to vector<1x32xf32>
    %186 = vector.broadcast %185 : vector<1x32xf32> to vector<8x32xf32>
    %187 = arith.mulf %186, %179 : vector<8x32xf32>
    %188 = math.sqrt %184 : vector<8x1xf32>
    %cst_85 = arith.constant 9.99999997E-7 : f32
    %189 = vector.broadcast %cst_85 : f32 to vector<8x1xf32>
    %190 = arith.addf %188, %189 : vector<8x1xf32>
    %191 = vector.broadcast %190 : vector<8x1xf32> to vector<8x32xf32>
    %192 = arith.divf %187, %191 : vector<8x32xf32>
    %193 = vector.shape_cast %173 : vector<32xf32> to vector<1x32xf32>
    %194 = vector.broadcast %193 : vector<1x32xf32> to vector<8x32xf32>
    %195 = arith.addf %192, %194 : vector<8x32xf32>
    %c0_86 = arith.constant 0 : index
    %c0_87 = arith.constant 0 : index
    %c0_88 = arith.constant 0 : index
    %196 = vector.load %arg19[%c0_86, %c0_87, %c0_88] : memref<1x8x32xf32, #tpu.memory_space<vmem>>, vector<1x8x32xf32>
    %197 = vector.shape_cast %196 : vector<1x8x32xf32> to vector<8x32xf32>
    %198 = vector.shape_cast %195 : vector<8x32xf32> to vector<1x8x32xf32>
    tpu.vector_store %arg19[%c0_86, %c0_87, %c0_88], %198 {strides = array<i32>} : memref<1x8x32xf32, #tpu.memory_space<vmem>>, vector<1x8x32xf32>,
    return
  }
  func.func @transform_0(%arg0: i32, %arg1: i32) -> (i32, i32, i32) {
    %c0_i32 = arith.constant 0 : i32
    %c0_i32_0 = arith.constant 0 : i32
    %c0_i32_1 = arith.constant 0 : i32
    return %arg0, %c0_i32, %c0_i32_0 : i32, i32, i32
  }
  func.func @transform_1(%arg0: i32, %arg1: i32) -> (i32, i32, i32) {
    %c0_i32 = arith.constant 0 : i32
    %c0_i32_0 = arith.constant 0 : i32
    %c0_i32_1 = arith.constant 0 : i32
    return %arg0, %c0_i32, %c0_i32_0 : i32, i32, i32
  }
  func.func @transform_2(%arg0: i32, %arg1: i32) -> (i32, i32, i32) {
    %c0_i32 = arith.constant 0 : i32
    %c0_i32_0 = arith.constant 0 : i32
    %c0_i32_1 = arith.constant 0 : i32
    return %arg0, %c0_i32, %c0_i32_0 : i32, i32, i32
  }
  func.func @transform_3(%arg0: i32, %arg1: i32) -> (i32, i32) {
    %c0_i32 = arith.constant 0 : i32
    %c0_i32_0 = arith.constant 0 : i32
    %c0_i32_1 = arith.constant 0 : i32
    return %c0_i32, %c0_i32_0 : i32, i32
  }
  func.func @transform_4(%arg0: i32, %arg1: i32) -> (i32, i32) {
    %c0_i32 = arith.constant 0 : i32
    %c0_i32_0 = arith.constant 0 : i32
    %c0_i32_1 = arith.constant 0 : i32
    return %c0_i32, %c0_i32_0 : i32, i32
  }
  func.func @transform_5(%arg0: i32, %arg1: i32) -> (i32, i32) {
    %c0_i32 = arith.constant 0 : i32
    %c0_i32_0 = arith.constant 0 : i32
    %c0_i32_1 = arith.constant 0 : i32
    return %c0_i32, %c0_i32_0 : i32, i32
  }
  func.func @transform_6(%arg0: i32, %arg1: i32) -> (i32, i32) {
    %c0_i32 = arith.constant 0 : i32
    %c0_i32_0 = arith.constant 0 : i32
    %c0_i32_1 = arith.constant 0 : i32
    return %c0_i32, %c0_i32_0 : i32, i32
  }
  func.func @transform_7(%arg0: i32, %arg1: i32) -> (i32, i32) {
    %c0_i32 = arith.constant 0 : i32
    %c0_i32_0 = arith.constant 0 : i32
    %c0_i32_1 = arith.constant 0 : i32
    return %c0_i32, %c0_i32_0 : i32, i32
  }
  func.func @transform_8(%arg0: i32, %arg1: i32) -> (i32, i32) {
    %c0_i32 = arith.constant 0 : i32
    %c0_i32_0 = arith.constant 0 : i32
    %c0_i32_1 = arith.constant 0 : i32
    return %c0_i32, %c0_i32_0 : i32, i32
  }
  func.func @transform_9(%arg0: i32, %arg1: i32) -> (i32, i32) {
    %c0_i32 = arith.constant 0 : i32
    %c0_i32_0 = arith.constant 0 : i32
    %c0_i32_1 = arith.constant 0 : i32
    return %c0_i32, %c0_i32_0 : i32, i32
  }
  func.func @transform_10(%arg0: i32, %arg1: i32) -> (i32, i32) {
    %c0_i32 = arith.constant 0 : i32
    %c0_i32_0 = arith.constant 0 : i32
    %c0_i32_1 = arith.constant 0 : i32
    return %c0_i32, %c0_i32_0 : i32, i32
  }
  func.func @transform_11(%arg0: i32, %arg1: i32) -> (i32, i32) {
    %c0_i32 = arith.constant 0 : i32
    %c0_i32_0 = arith.constant 0 : i32
    %c0_i32_1 = arith.constant 0 : i32
    return %c0_i32, %c0_i32_0 : i32, i32
  }
  func.func @transform_12(%arg0: i32, %arg1: i32) -> (i32, i32) {
    %c0_i32 = arith.constant 0 : i32
    %c0_i32_0 = arith.constant 0 : i32
    %c0_i32_1 = arith.constant 0 : i32
    return %c0_i32, %c0_i32_0 : i32, i32
  }
  func.func @transform_13(%arg0: i32, %arg1: i32) -> (i32, i32) {
    %c0_i32 = arith.constant 0 : i32
    %c0_i32_0 = arith.constant 0 : i32
    %c0_i32_1 = arith.constant 0 : i32
    return %c0_i32, %c0_i32_0 : i32, i32
  }
  func.func @transform_14(%arg0: i32, %arg1: i32) -> (i32, i32) {
    %c0_i32 = arith.constant 0 : i32
    %c0_i32_0 = arith.constant 0 : i32
    %c0_i32_1 = arith.constant 0 : i32
    return %c0_i32, %c0_i32_0 : i32, i32
  }
  func.func @transform_15(%arg0: i32, %arg1: i32) -> (i32, i32) {
    %c0_i32 = arith.constant 0 : i32
    %c0_i32_0 = arith.constant 0 : i32
    %c0_i32_1 = arith.constant 0 : i32
    return %c0_i32, %c0_i32_0 : i32, i32
  }
  func.func @transform_16(%arg0: i32, %arg1: i32) -> (i32, i32) {
    %c0_i32 = arith.constant 0 : i32
    %c0_i32_0 = arith.constant 0 : i32
    %c0_i32_1 = arith.constant 0 : i32
    return %c0_i32, %c0_i32_0 : i32, i32
  }
  func.func @transform_17(%arg0: i32, %arg1: i32) -> (i32, i32, i32) {
    %c0_i32 = arith.constant 0 : i32
    %c0_i32_0 = arith.constant 0 : i32
    return %arg0, %arg1, %c0_i32 : i32, i32, i32
  }
}

</mosaic_0001>

<bundles_post_ra>
// kernel: multi_representation_transformer_forward.2
= control target key start
LH: loop header
LB: loop body
LE: loop exit
PB: predicated region body
PF: predicated region fallthrough
CT: control target
= control target key end

     0   :  { %s2219_s24 = smov 0   ;;  %s2221_s25 = smov 0   ;;  %s2427_s0 = inlined_call_operand.vmem [shape: f32[2,8,32], index: 0, kind: input, shape index: {}]   ;;  %s2428_s1 = inlined_call_operand.vmem [shape: f32[2,8,3], index: 1, kind: input, shape index: {}]   ;;  %s2429_s2 = inlined_call_operand.vmem [shape: f32[2,1,8], index: 2, kind: input, shape index: {}]   ;;  %s2430_s3 = inlined_call_operand.vmem [shape: f32[1,32], index: 3, kind: input, shape index: {}]   ;;  %s2431_s4 = inlined_call_operand.vmem [shape: f32[1,32], index: 4, kind: input, shape index: {}]   ;;  %s2432_s5 = inlined_call_operand.vmem [shape: bf16[32,96], index: 5, kind: input, shape index: {}]   ;;  %s2433_s6 = inlined_call_operand.vmem [shape: f32[1,96], index: 6, kind: input, shape index: {}]   ;;  %s2434_s7 = inlined_call_operand.vmem [shape: bf16[32,32], index: 7, kind: input, shape index: {}]   ;;  %s2435_s8 = inlined_call_operand.vmem [shape: f32[1,32], index: 8, kind: input, shape index: {}]   ;;  %s2436_s9 = inlined_call_operand.vmem [shape: f32[1,32], index: 9, kind: input, shape index: {}]   ;;  %s2437_s10 = inlined_call_operand.vmem [shape: f32[1,32], index: 10, kind: input, shape index: {}]   ;;  %s2438_s11 = inlined_call_operand.vmem [shape: bf16[32,64], index: 11, kind: input, shape index: {}]   ;;  %s2439_s12 = inlined_call_operand.vmem [shape: f32[1,64], index: 12, kind: input, shape index: {}]   ;;  %s2440_s13 = inlined_call_operand.vmem [shape: bf16[64,32], index: 13, kind: input, shape index: {}]   ;;  %s2441_s14 = inlined_call_operand.vmem [shape: f32[1,32], index: 14, kind: input, shape index: {}]   ;;  %s2442_s15 = inlined_call_operand.vmem [shape: f32[1,32], index: 15, kind: input, shape index: {}]   ;;  %s2443_s16 = inlined_call_operand.vmem [shape: f32[1,32], index: 16, kind: input, shape index: {}]   ;;  %s2444_s17 = inlined_call_operand.vmem [shape: f32[2,8,32], index: 17, kind: output, shape index: {}]  }
   0x1   :  { %2445 = sst [smem:[#allocation4_spill]] %s2427_s0  ;;  %s2223_s26 = smov 0  }
   0x2   :  { %2446 = sst [smem:[#allocation5_spill]] %s2428_s1 }
   0x3 LB: > { %s39_s15 = sadd.s32 1, %s2106_s25  ;;  %p1838_p0 = scmp.ge.s32.totalorder %s2110_s26, 1  ;;  %s2110_s26 = sphi %s2223_s26, %s27_s26   ;;  %s2106_s25 = sphi %s2221_s25, %s2450_s25   ;;  %s2102_s24 = sphi %s2219_s24, %s2449_s24  }
   0x4   : > { %p41_p1 = scmp.ge.s32.totalorder %s39_s15, 2  ;;  %p517_p2 = scmp.lt.s32.totalorder %s2110_s26, 3 }
   0x6   : > { %s2452_s15 = smov (%p41_p1, %s39_s15), 0  ;;  %p518_p3 = pnand %p1838_p0, %p517_p2 }
   0x7   : > { %p577_p4 = scmp.lt.s32.totalorder (!%p518_p3), %s2102_s24, 1  ;;  %vm603_vm0 = vcmask (!%p518_p3), 261120   ;;  %s2447_s29 = sld [smem:[#allocation4_spill]] (!%p518_p3)  ;;  %v2045_v7 = vld [vmem:[%s2432_s5] sm:$0xff] (!%p518_p3)   ;;  %v2112_v8 = vmov (!%p518_p3), 0.0   ;;  %vm2113_vm1 = vmmov (!%p518_p3), 0   ;;  %v837_v59 = vlaneseq (!%p518_p3) }
   0x8   : > { %521 = sbr.rel (%p518_p3) target bundleno = 2645 (0xa55), region = 88  ;;  %1915 = vmatprep.subr.bf16.mxu0 (!%p518_p3), %v2112_v8  ;;  %1919 = vmatprep.mubr.msk.bf16.mxu0 (!%p518_p3), %vm2113_vm1, %v2112_v8  ;;  %v2046_v9 = vld [vmem:[%s2432_s5 + $0x8] sm:$0xff] (!%p518_p3)   ;;  %v1842_v18 = vld [vmem:[%s2430_s3] ss:$0 sm:$0xff] (!%p518_p3)  ;;  %vm721_vm4 = vcmask (!%p518_p3), 23552   ;;  %vm709_vm5 = vcmask (!%p518_p3), 257024  }
   0x9   : > { %1916 = vmatpush3.bf16.msra.mxu0 (!%p518_p3), %v2045_v7  ;;  %1928 = vmatprep.subr.bf16.mxu1 (!%p518_p3), %v2112_v8  ;;  %v1843_v21 = vld [vmem:[%s2431_s4] ss:$0 sm:$0xff] (!%p518_p3)  ;;  %vm712_vm6 = vcmask (!%p518_p3), 781568   ;;  %s2114_s19 = smov (!%p518_p3), 120   ;;  %s2115_s1 = smov (!%p518_p3), 96   ;;  %vm991_vm7 = vcmask (!%p518_p3), 64512  }
   0xa   : > { %1917 = vmatprep.subr.bf16.mxu0 (!%p518_p3), %v2112_v8  ;;  %1930 = vmatprep.mubr.msk.bf16.mxu1 (!%p518_p3), %vm2113_vm1, %v2112_v8  ;;  %v1844_v28 = vld [vmem:[%s2433_s6] ss:$0 sm:$0xff] (!%p518_p3)  ;;  %s2116_s20 = smov (!%p518_p3), 88   ;;  %s2117_s21 = smov (!%p518_p3), 80   ;;  %v838_v60 = vshrl.u32 (!%p518_p3), %v837_v59, 7  ;;  %vm1055_vm11 = vcmask (!%p518_p3), 1043456  }
   0xb   : > { %s2118_s22 = smov (!%p518_p3), 112   ;;  %s2119_s23 = smov (!%p518_p3), 72   ;;  %vm1222_vm12 = vcmask (!%p518_p3), 130112   ;;  %vm1346_vm13 = vcmask (!%p518_p3), 195712   ;;  %vm1470_vm14 = vcmask (!%p518_p3), 261312  }
   0xc   : > { %s2120_s27 = smov (!%p518_p3), 104   ;;  %s2121_s28 = smov (!%p518_p3), 56   ;;  %v839_v61 = vsub.s32 (!%p518_p3), 0, %v838_v60 }
   0xd   : > { %1918 = vmatpush3.bf16.msra.mxu0 (!%p518_p3), %v2046_v9  ;;  %s2124_s18 = smov (!%p518_p3), 48  }
   0xe   : > { %1923 = vmatprep.subr.mxu0 (!%p518_p3), %v2112_v8 }
   0xf   : > { %s2454_s24 = smov (!%p577_p4, %s2102_s24), 1 }
  0x10   : > { %s2240_s16 = sshll.u32 %s2454_s24, 3  ;;  %s587_s30 = scalar_lea.vmem %s2429_s2, %s2454_s24 }
  0x11   : > { %s580_s0 = scalar_lea.vmem %s2447_s29, %s2240_s16  ;;  %s2448_s29 = sld [smem:[#allocation5_spill]] }
  0x12   : > { %v2246_v0 = vld [vmem:[%s580_s0] sm:$0xff]  ;;  %s2123_s24 = smov 64  }
  0x13   : > { %v604_v1 = vsel %vm603_vm0, %v2246_v0, 0.0 }
  0x14   : > { %605 = vadd.xlane.f32.xlu0 %v604_v1 }
  0x17   : > { %s584_s0 = scalar_lea.vmem %s2448_s29, %s2240_s16 }
  0x18   : > { %v718_v25 = vld [vmem:[%s584_s0] sm:$0xff] }
  0x19   : > { %v725_v26 = vmul.f32 %v718_v25, %v718_v25 }
  0x1b   : > { %v726_v27 = vsel %vm721_vm4, %v725_v26, 0.0 }
  0xa1   : > { %v606_v2 = vpop.xlane.xlu0 %605 }
  0xa2   : > { %v608_v3 = vmul.f32 0.03125, %v606_v2 }
  0xa4   : > { %v609_v4 = vsub.f32 %v2246_v0, %v608_v3 }
  0xa6   : > { %v610_v5 = vmul.f32 %v609_v4, %v609_v4  ;;  %v622_v19 = vmul.f32 %v1842_v18, %v609_v4 }
  0xa8   : > { %v611_v6 = vsel %vm603_vm0, %v610_v5, 0.0 }
  0xa9   : > { %612 = vadd.xlane.f32.xlu0 %v611_v6 }
 0x136   : > { %v613_v10 = vpop.xlane.xlu0 %612 }
 0x137   : > { %v615_v11 = vmul.f32 0.032258064, %v613_v10 }
 0x139   : > { %2062 = vrsqrt.f32 %v615_v11  ;;  %vm625_vm2 = vcmp.eq.f32.partialorder %v615_v11, inf  ;;  %v628_v14 = vand.u32 2147483648, %v615_v11  ;;  %vm627_vm3 = vcmp.eq.f32.partialorder %v615_v11, 0.0 }
 0x143   : > { %v2063_v12 = vpop.eup %2062 }
 0x144   : > { %v624_v13 = vmul.f32 %v2063_v12, %v615_v11 }
 0x146   : > { %v626_v15 = vsel %vm625_vm2, %v615_v11, %v624_v13  ;;  %v2122_v11 = vmov 1966171168   ;;  %vm1682_vm2 = vcmask 523264  }
 0x147   : > { %v629_v16 = vsel %vm627_vm3, %v628_v14, %v626_v15  ;;  %v859_v12 = vunpack.c.l.s4 %v2122_v11 }
 0x148   : > { %v630_v17 = vadd.f32 1e-06, %v629_v16 }
 0x149   : > { %v860_v13 = vunpack.c.0.s8 %v859_v12 }
 0x14a   : > { %2064 = vrcp.f32 %v630_v17 }
 0x154   : > { %v2065_v20 = vpop.eup %2064 }
 0x155   : > { %v632_v22 = vmul.f32 %v2065_v20, %v622_v19  ;;  %v863_v19 = vsub.s32 %v860_v13, %v838_v60 }
 0x157   : > { %v639_v23 = vadd.f32 %v1843_v21, %v632_v22 }
 0x159   : > { %v640_v24 = vpack.c.bf16 %v639_v23, %v639_v23  ;;  %v852_v23 = vld [vmem:[%s587_s30] sm:$0x1] }
 0x15a   : > { %vm853_vm10 = vcmp.gt.f32.partialorder %v852_v23, 0.0 }
 0x15b   : > { %1920 = vmatmul.mubr.msk.bf16.vlgmr.msra.gmra.mrb[0].mxu0 %vm603_vm0, %v640_v24 }
 0x15c   : > { %1925 = vmatprep.mubr.msk.f32.mxu0 %vm2113_vm1, %v2112_v8  ;;  %1924 = vmatpush3.xpose.msk.msra.mxu0 %vm721_vm4, %v718_v25 }
 0x15d   : > { %1934 = vmatprep.subr.bf16.mxu0 %v2112_v8 }
 0x163   : > { %1926 = vmatmul.mubr.msk.f32.vlgmr.msra.gmra.mrb[4].mxu0 %vm721_vm4, %v718_v25 }
 0x164   : > { %1936 = vmatprep.mubr.msk.bf16.mxu0 %vm2113_vm1, %v2112_v8 }
 0x22e   : > { %v701_v29 = vpop.f32.mrb[0].mxu0 }
 0x22f   : > { %v702_v30 = vadd.f32 %v1844_v28, %v701_v29  ;;  %v1921_v31 = vpop.f32.mrb[1].mxu0 }
 0x230   : > { %v704_v32 = vpop.f32.mrb[2].mxu0 }
 0x231   : > { %v707_v33 = vmul.f32 0.35355338, %v702_v30  ;;  %v1922_v34 = vpop.f32.mrb[3].mxu0  ;;  %v711_v36 = vpack.c.bf16 %v702_v30, %v702_v30 }
 0x233   : > { %v708_v35 = vpack.c.bf16 %v707_v33, %v707_v33 }
 0x235   : > { %710 = vst.msk [vmem:[#allocation2] sm:$0xf] %vm709_vm5, %v708_v35 }
 0x236   : > { %713 = vst.msk [vmem:[#allocation2] sm:$0xf] %vm712_vm6, %v711_v36  ;;  %v801_v57 = vpop.f32.mrb[4].mxu0 }
 0x237   : > { %v1927_v58 = vpop.f32.mrb[5].mxu0  ;;  %v842_v2 = vmul.f32 2.0, %v801_v57 }
 0x23d   : > { %v2047_v37 = vld [vmem:[#allocation2] ss:$0 sps:$4 sm:$0xff]  }
 0x23e   : > { %v2285_v38 = vld [vmem:[#allocation2] ss:$0 sps:$4 sm:$0xff]   ;;  %1105 = vrot.lane.b32.xlu0 %v2047_v37, %s2114_s19  ;;  %s2125_s19 = smov 40  }
 0x23f   : > { %931 = vrot.lane.b32.xlu1 %v2285_v38, %s2115_s1  ;;  %v2049_v39 = vld [vmem:[#allocation2] ss:$0 sps:$4 sm:$0xff]   ;;  %s2126_s1 = smov 8  }
 0x240   : > { %v2288_v40 = vld [vmem:[#allocation2] ss:$0 sps:$4 sm:$0xff]  }
 0x241   : > { %v2051_v41 = vld [vmem:[#allocation2] ss:$0 sps:$4 sm:$0xff]  }
 0x242   : > { %v2291_v42 = vld [vmem:[#allocation2] ss:$0 sps:$4 sm:$0xff]  }
 0x243   : > { %1110 = vrot.lane.b32.xlu1 %v2049_v39, %s2116_s20  ;;  %v2053_v43 = vld [vmem:[#allocation2] ss:$0 sps:$4 sm:$0xff]  }
 0x244   : > { %v926_v47 = vld [vmem:[#allocation2] sm:$0xf] }
 0x247   : > { %1234 = vrot.lane.b32.xlu1 %v2288_v40, %s2117_s21 }
 0x24b   : > { %1229 = vrot.lane.b32.xlu1 %v2051_v41, %s2118_s22 }
 0x24f   : > { %1358 = vrot.lane.b32.xlu1 %v2291_v42, %s2119_s23 }
 0x253   : > { %1353 = vrot.lane.b32.xlu1 %v2053_v43, %s2120_s27  ;;  %s2127_s27 = smov 16  }
 0x25d   : > { %723 = vadd.xlane.f32.xlu0 %v726_v27 }
 0x277   : > { %727 = vadd.xlane.f32.xlu1 %v726_v27 }
 0x2b0   : > { %v1106_v50 = vpop.permute.xlu0 %1105 }
 0x2b1   : > { %v932_v44 = vpop.permute.xlu1 %931 }
 0x2b2   : > { %v996_v45 = vsel %vm991_vm7, %v932_v44, 0 }
 0x2b3   : > { %1929 = vmatpush3.bf16.xpose.msra.mxu1 %v996_v45 }
 0x2b4   : > { %1940 = vmatprep.subr.bf16.mxu1 %v2112_v8 }
 0x2b5   : > { %v1111_v46 = vpop.permute.xlu1 %1110 }
 0x2b6   : > { %v1116_v48 = vsel %vm991_vm7, %v1111_v46, 0 }
 0x2b9   : > { %v1235_v49 = vpop.permute.xlu1 %1234 }
 0x2ba   : > { %1931 = vmatmul.mubr.msk.bf16.vlgmr.msra.gmra.mrb[0].mxu1 %vm991_vm7, %v926_v47  ;;  %v1240_v52 = vsel %vm991_vm7, %v1235_v49, 0 }
 0x2bb   : > { %1941 = vmatpush3.bf16.xpose.msra.mxu1 %v1116_v48  ;;  %1942 = vmatprep.mubr.msk.bf16.mxu1 %vm2113_vm1, %v2112_v8 }
 0x2bc   : > { %1952 = vmatprep.subr.bf16.mxu1 %v2112_v8 }
 0x2bd   : > { %v1230_v51 = vpop.permute.xlu1 %1229 }
 0x2c1   : > { %v1359_v53 = vpop.permute.xlu1 %1358 }
 0x2c2   : > { %1943 = vmatmul.mubr.msk.bf16.vlgmr.msra.gmra.mrb[4].mxu1 %vm991_vm7, %v1106_v50  ;;  %v1364_v54 = vsel %vm991_vm7, %v1359_v53, 0 }
 0x2c3   : > { %1953 = vmatpush3.bf16.xpose.msra.mxu1 %v1240_v52  ;;  %1954 = vmatprep.mubr.msk.bf16.mxu1 %vm2113_vm1, %v2112_v8 }
 0x2c4   : > { %1964 = vmatprep.subr.bf16.mxu1 %v2112_v8 }
 0x2c5   : > { %v1354_v55 = vpop.permute.xlu1 %1353 }
 0x2ca   : > { %1955 = vmatmul.mubr.msk.bf16.vlgmr.msra.gmra.mrb[8].mxu1 %vm991_vm7, %v1230_v51 }
 0x2cb   : > { %1965 = vmatpush3.bf16.xpose.msra.mxu1 %v1364_v54  ;;  %1966 = vmatprep.mubr.msk.bf16.mxu1 %vm2113_vm1, %v2112_v8 }
 0x2cc   : > { %1976 = vmatprep.subr.bf16.mxu1 %v2112_v8 }
 0x2d2   : > { %1967 = vmatmul.mubr.msk.bf16.vlgmr.msra.gmra.mrb[12].mxu1 %vm991_vm7, %v1354_v55 }
 0x2d3   : > { %1980 = vmatprep.mubr.msk.bf16.mxu1 %vm2113_vm1, %v2112_v8 }
 0x2ea   : > { %v724_v63 = vpop.xlane.xlu0 %723 }
 0x304   : > { %v728_v56 = vpop.xlane.xlu1 %727 }
 0x305   : > { %805 = vxpose.xlu1.b32.start.end [1/1] (short) (narrow) %v728_v56, 8 }
 0x323   : > { %1170 = vrot.lane.b32.xlu1 %v2049_v39, %s2121_s28  ;;  %s2128_s28 = smov 24  }
 0x385   : > { %v821_v62 = vpop.trf.xlu1 }
 0x386   : > { %v840_v1 = vrot.slane %v821_v62, %v839_v61 }
 0x388   : > { %v841_v3 = vadd.f32 %v840_v1, %v724_v63 }
 0x38a   : > { %v843_v4 = vsub.f32 %v841_v3, %v842_v2 }
 0x38c   : > { %v844_v5 = vmax.f32 %v843_v4, 0.0 }
 0x38d   : > { %v2314_v6 = vpop.f32.mrb[0].mxu1 }
 0x38e   : > { %2066 = vrsqrt.f32 %v844_v5  ;;  %v1932_v7 = vpop.f32.mrb[1].mxu1  ;;  %vm847_vm8 = vcmp.eq.f32.partialorder %v844_v5, inf  ;;  %v850_v21 = vand.u32 2147483648, %v844_v5  ;;  %vm849_vm9 = vcmp.eq.f32.partialorder %v844_v5, 0.0 }
 0x38f   : > { %v1035_v9 = vpop.f32.mrb[2].mxu1 }
 0x390   : > { %v1933_v10 = vpop.f32.mrb[3].mxu1 }
 0x395   : > { %v1152_v14 = vpop.f32.mrb[4].mxu1 }
 0x396   : > { %v1944_v15 = vpop.f32.mrb[5].mxu1 }
 0x397   : > { %v1155_v16 = vpop.f32.mrb[6].mxu1 }
 0x398   : > { %v2067_v17 = vpop.eup %2066  ;;  %v1945_v18 = vpop.f32.mrb[7].mxu1 }
 0x399   : > { %v846_v20 = vmul.f32 %v2067_v17, %v844_v5 }
 0x39b   : > { %v848_v22 = vsel %vm847_vm8, %v844_v5, %v846_v20 }
 0x39c   : > { %v851_v24 = vsel %vm849_vm9, %v850_v21, %v848_v22 }
 0x39d   : > { %v857_v25 = vcombine.high %v851_v24, %v851_v24  ;;  %v864_v26 = vrot.slane %v851_v24, %v863_v19  ;;  %v1276_v27 = vpop.f32.mrb[8].mxu1 }
 0x39e   : > { %v1956_v28 = vpop.f32.mrb[9].mxu1 }
 0x39f   : > { %v871_v29 = vrot.slane %v857_v25, %v863_v19  ;;  %v872_v30 = vcombine.high %v864_v26, %v864_v26  ;;  %v880_v31 = vrot.slane %v864_v26, %v863_v19  ;;  %v1279_v32 = vpop.f32.mrb[10].mxu1 }
 0x3a0   : > { %v1957_v33 = vpop.f32.mrb[11].mxu1 }
 0x3a1   : > { %v873_v34 = vcombine.high %v871_v29, %v871_v29  ;;  %v887_v35 = vrot.slane %v871_v29, %v863_v19  ;;  %v894_v36 = vrot.slane %v872_v30, %v863_v19  ;;  %v902_v37 = vcombine.high %v880_v31, %v880_v31 }
 0x3a2   : > { %v914_v39 = vsel %vm853_vm10, %v880_v31, -1e+09 }
 0x3a3   : > { %v901_v41 = vrot.slane %v873_v34, %v863_v19  ;;  %v903_v43 = vcombine.high %v887_v35, %v887_v35  ;;  %v904_v44 = vcombine.high %v894_v36, %v894_v36  ;;  %v915_v45 = vsel %vm853_vm10, %v894_v36, -1e+09 }
 0x3a4   : > { %v916_v46 = vsel %vm853_vm10, %v902_v37, -1e+09  ;;  %v918_v47 = vsel %vm853_vm10, %v887_v35, -1e+09  ;;  %v941_v48 = vcombine.low %v914_v39, %v915_v45 }
 0x3a5   : > { %v905_v49 = vcombine.high %v901_v41, %v901_v41  ;;  %v917_v50 = vsel %vm853_vm10, %v904_v44, -1e+09  ;;  %v919_v51 = vsel %vm853_vm10, %v901_v41, -1e+09  ;;  %v920_v52 = vsel %vm853_vm10, %v903_v43, -1e+09  ;;  %v1171_v43 = vpop.permute.xlu1 %1170 }
 0x3a6   : > { %v942_v53 = vcombine.low %v916_v46, %v917_v50  ;;  %v943_v54 = vcombine.low %v918_v47, %v919_v51  ;;  %v1400_v55 = vpop.f32.mrb[12].mxu1  ;;  %v951_v59 = vrot.slane %v941_v48, %v863_v19  ;;  %v1176_v46 = vsel %vm1055_vm11, %v1171_v43, 0 }
 0x3a7   : > { %v921_v56 = vsel %vm853_vm10, %v905_v49, -1e+09  ;;  %v1968_v57 = vpop.f32.mrb[13].mxu1 }
 0x3a8   : > { %v944_v58 = vcombine.low %v920_v52, %v921_v56  ;;  %v958_v60 = vrot.slane %v942_v53, %v863_v19  ;;  %v1403_v61 = vpop.f32.mrb[14].mxu1  ;;  %v965_v63 = vrot.slane %v943_v54, %v863_v19 }
 0x3a9   : > { %v1969_v62 = vpop.f32.mrb[15].mxu1 }
 0x3aa   : > { %v972_v1 = vrot.slane %v944_v58, %v863_v19  ;;  %v973_v2 = vcombine.low %v951_v59, %v958_v60 }
 0x3ac   : > { %v974_v3 = vcombine.low %v965_v63, %v972_v1  ;;  %v981_v4 = vrot.slane %v973_v2, %v863_v19 }
 0x3ae   : > { %v988_v5 = vrot.slane %v974_v3, %v863_v19 }
 0x3b0   : > { %v989_v7 = vcombine.low %v981_v4, %v988_v5  ;;  %v2054_v5 = vld [vmem:[%s2434_s7] sm:$0xff]  }
 0x3b1   : > { %1977 = vmatpush3.bf16.msra.mxu1 %v2054_v5 }
 0x3b2   : > { %v1033_v9 = vadd.f32 %v2314_v6, %v989_v7  ;;  %v1153_v10 = vadd.f32 %v1152_v14, %v989_v7  ;;  %v1277_v11 = vadd.f32 %v1276_v27, %v989_v7  ;;  %v1401_v12 = vadd.f32 %v1400_v55, %v989_v7  ;;  %v2055_v7 = vld [vmem:[%s2434_s7 + $0x8] sm:$0xff]   ;;  %1978 = vmatprep.subr.bf16.mxu1 %v2112_v8 }
 0x3b4   : > { %v1038_v13 = vsel %vm991_vm7, %v1033_v9, -inf  ;;  %v1158_v15 = vsel %vm991_vm7, %v1153_v10, -inf  ;;  %v1282_v16 = vsel %vm991_vm7, %v1277_v11, -inf  ;;  %v1406_v17 = vsel %vm991_vm7, %v1401_v12, -inf }
 0x3b5   : > { %1039 = vmax.xlane.f32.xlu0 %v1038_v13  ;;  %1979 = vmatpush3.bf16.msra.mxu1 %v2055_v7 }
 0x3b6   : > { %1992 = vmatprep.subr.bf16.mxu1 %v2112_v8 }
 0x3b9   : > { %1159 = vmax.xlane.f32.xlu0 %v1158_v15 }
 0x3bd   : > { %1283 = vmax.xlane.f32.xlu0 %v1282_v16 }
 0x3c1   : > { %1407 = vmax.xlane.f32.xlu0 %v1406_v17 }
 0x3d7   : > { %1050 = vrot.lane.b32.xlu0 %v2285_v38, %s2123_s24 }
 0x442   : > { %v1040_v18 = vpop.xlane.xlu0 %1039 }
 0x443   : > { %v1041_v6 = vsub.f32 %v1033_v9, %v1040_v18 }
 0x445   : > { %v1042_v14 = vmul.f32 1.442695, %v1041_v6 }
 0x446   : > { %v1160_v19 = vpop.xlane.xlu0 %1159 }
 0x447   : > { %2068 = vpow2.f32 %v1042_v14  ;;  %v1161_v20 = vsub.f32 %v1153_v10, %v1160_v19 }
 0x449   : > { %v1162_v21 = vmul.f32 1.442695, %v1161_v20 }
 0x44a   : > { %v1284_v22 = vpop.xlane.xlu0 %1283 }
 0x44b   : > { %2070 = vpow2.f32 %v1162_v21  ;;  %v1285_v29 = vsub.f32 %v1277_v11, %v1284_v22  ;;  %v1868_v22 = vld [vmem:[%s2435_s8] ss:$0 sm:$0xff] }
 0x44d   : > { %v1286_v30 = vmul.f32 1.442695, %v1285_v29 }
 0x44e   : > { %v1408_v23 = vpop.xlane.xlu0 %1407 }
 0x44f   : > { %v1409_v31 = vsub.f32 %v1401_v12, %v1408_v23  ;;  %2072 = vpow2.f32 %v1286_v30 }
 0x451   : > { %v2069_v24 = vpop.eup %2068  ;;  %v1410_v32 = vmul.f32 1.442695, %v1409_v31 }
 0x452   : > { %v1051_v25 = vpop.permute.xlu0 %1050  ;;  %v1044_v26 = vsel %vm991_vm7, %v2069_v24, 0.0 }
 0x453   : > { %v1057_v27 = vsel %vm1055_vm11, %v1051_v25, 0  ;;  %1045 = vadd.xlane.f32.xlu0 %v1044_v26  ;;  %2074 = vpow2.f32 %v1410_v32 }
 0x454   : > { %1935 = vmatpush3.bf16.msra.mxu0 %v1057_v27 }
 0x455   : > { %v2071_v38 = vpop.eup %2070  ;;  %1946 = vmatprep.subr.bf16.mxu0 %v2112_v8 }
 0x456   : > { %v1164_v28 = vsel %vm991_vm7, %v2071_v38, 0.0 }
 0x457   : > { %1165 = vadd.xlane.f32.xlu0 %v1164_v28 }
 0x459   : > { %v2073_v33 = vpop.eup %2072 }
 0x45a   : > { %v1288_v34 = vsel %vm991_vm7, %v2073_v33, 0.0 }
 0x45d   : > { %v2075_v35 = vpop.eup %2074 }
 0x45e   : > { %v1412_v36 = vsel %vm991_vm7, %v2075_v35, 0.0 }
 0x46d   : > { %1294 = vrot.lane.b32.xlu0 %v2288_v40, %s2124_s18 }
 0x48c   : > { %1289 = vadd.xlane.f32.xlu0 %v1288_v34  ;;  %v2058_v34 = vld [vmem:[%s2440_s13] sm:$0xff]  }
 0x490   : > { %1413 = vadd.xlane.f32.xlu0 %v1412_v36 }
 0x4a6   : > { %1418 = vrot.lane.b32.xlu0 %v2291_v42, %s2125_s19 }
 0x4e0   : > { %v1046_v37 = vpop.xlane.xlu0 %1045 }
 0x4e1   : > { %2076 = vrcp.f32 %v1046_v37 }
 0x4e4   : > { %v1166_v40 = vpop.xlane.xlu0 %1165 }
 0x4e5   : > { %2078 = vrcp.f32 %v1166_v40 }
 0x4e8   : > { %v1295_v42 = vpop.permute.xlu0 %1294 }
 0x4e9   : > { %v1300_v49 = vsel %vm1055_vm11, %v1295_v42, 0 }
 0x4eb   : > { %v2077_v39 = vpop.eup %2076 }
 0x4ec   : > { %v1048_v41 = vmul.f32 %v2077_v39, %v2069_v24 }
 0x4ee   : > { %v1049_v44 = vpack.c.bf16 %v1048_v41, %v1048_v41 }
 0x4ef   : > { %v2079_v45 = vpop.eup %2078 }
 0x4f0   : > { %1937 = vmatmul.mubr.msk.bf16.vlgmr.msra.gmra.mrb[8].mxu0 %vm991_vm7, %v1049_v44  ;;  %v1168_v47 = vmul.f32 %v2079_v45, %v2071_v38 }
 0x4f1   : > { %1947 = vmatpush3.bf16.msra.mxu0 %v1176_v46  ;;  %1948 = vmatprep.mubr.msk.bf16.mxu0 %vm2113_vm1, %v2112_v8  ;;  %v1869_v46 = vld [vmem:[%s2436_s9] ss:$0 sm:$0xff] }
 0x4f2   : > { %1958 = vmatprep.subr.bf16.mxu0 %v2112_v8  ;;  %v1169_v48 = vpack.c.bf16 %v1168_v47, %v1168_v47 }
 0x4f8   : > { %1949 = vmatmul.mubr.msk.bf16.vlgmr.msra.gmra.mrb[12].mxu0 %vm991_vm7, %v1169_v48  ;;  %v1870_v48 = vld [vmem:[%s2437_s10] ss:$0 sm:$0xff] }
 0x4f9   : > { %1959 = vmatpush3.bf16.msra.mxu0 %v1300_v49  ;;  %1960 = vmatprep.mubr.msk.bf16.mxu0 %vm2113_vm1, %v2112_v8 }
 0x4fa   : > { %1970 = vmatprep.subr.bf16.mxu0 %v2112_v8 }
 0x519   : > { %v1290_v50 = vpop.xlane.xlu0 %1289 }
 0x51a   : > { %2080 = vrcp.f32 %v1290_v50 }
 0x51d   : > { %v1414_v51 = vpop.xlane.xlu0 %1413 }
 0x51e   : > { %2082 = vrcp.f32 %v1414_v51 }
 0x521   : > { %v1419_v54 = vpop.permute.xlu0 %1418 }
 0x522   : > { %v1424_v57 = vsel %vm1055_vm11, %v1419_v54, 0  ;;  %v1871_v54 = vld [vmem:[%s2439_s12] ss:$0 sm:$0xff] }
 0x524   : > { %v2081_v52 = vpop.eup %2080 }
 0x525   : > { %v1292_v53 = vmul.f32 %v2081_v52, %v2073_v33  ;;  %v2056_v33 = vld [vmem:[%s2438_s11] sm:$0xff]   ;;  %v2060_v52 = vld [vmem:[%s2440_s13 + $0x10] sm:$0xff]  }
 0x527   : > { %v1293_v55 = vpack.c.bf16 %v1292_v53, %v1292_v53  ;;  %v2061_v53 = vld [vmem:[%s2440_s13 + $0x18] sm:$0xff]  }
 0x528   : > { %v2083_v56 = vpop.eup %2082 }
 0x529   : > { %1961 = vmatmul.mubr.msk.bf16.vlgmr.msra.gmra.mrb[16].mxu0 %vm991_vm7, %v1293_v55  ;;  %v1416_v58 = vmul.f32 %v2083_v56, %v2075_v35  ;;  %v2059_v35 = vld [vmem:[%s2440_s13 + $0x8] sm:$0xff]  }
 0x52a   : > { %1971 = vmatpush3.bf16.msra.mxu0 %v1424_v57  ;;  %1972 = vmatprep.mubr.msk.bf16.mxu0 %vm2113_vm1, %v2112_v8 }
 0x52b   : > { %1984 = vmatprep.subr.bf16.mxu0 %v2112_v8  ;;  %v1417_v59 = vpack.c.bf16 %v1416_v58, %v1416_v58 }
 0x531   : > { %1973 = vmatmul.mubr.msk.bf16.vlgmr.msra.gmra.mrb[20].mxu0 %vm991_vm7, %v1417_v59 }
 0x532   : > { %1988 = vmatprep.mubr.msk.bf16.mxu0 %vm2113_vm1, %v2112_v8  ;;  %1985 = vmatpush3.bf16.msra.mxu0 %v2056_v33 }
 0x533   : > { %1986 = vmatprep.subr.bf16.mxu0 %v2112_v8 }
 0x5c3   : > { %v1093_v60 = vpop.f32.mrb[8].mxu0 }
 0x5c4   : > { %1099 = vst.msk [vmem:[#allocation3] sm:$0xff] %vm991_vm7, %v1093_v60  ;;  %v1938_v61 = vpop.f32.mrb[9].mxu0 }
 0x5c5   : > { %v1096_v62 = vpop.f32.mrb[10].mxu0 }
 0x5c6   : > { %v1939_v63 = vpop.f32.mrb[11].mxu0  ;;  %v1880_v62 = vld [vmem:[%s2441_s14] ss:$0 sm:$0xff] }
 0x5cb   : > { %v1212_v1 = vpop.f32.mrb[12].mxu0 }
 0x5cc   : > { %1219 = vrot.lane.b32.xlu0 %v1212_v1, %s2126_s1  ;;  %v1950_v2 = vpop.f32.mrb[13].mxu0 }
 0x5cd   : > { %v1215_v3 = vpop.f32.mrb[14].mxu0 }
 0x5ce   : > { %v1951_v4 = vpop.f32.mrb[15].mxu0 }
 0x5fc   : > { %v1336_v9 = vpop.f32.mrb[16].mxu0 }
 0x5fd   : > { %1343 = vrot.lane.b32.xlu0 %v1336_v9, %s2127_s27  ;;  %v1962_v10 = vpop.f32.mrb[17].mxu0  ;;  %s594_s27 = scalar_lea.vmem %s2444_s17, %s2240_s16 }
 0x5fe   : > { %v1339_v11 = vpop.f32.mrb[18].mxu0 }
 0x5ff   : > { %v1963_v12 = vpop.f32.mrb[19].mxu0 }
 0x604   : > { %v1460_v13 = vpop.f32.mrb[20].mxu0 }
 0x605   : > { %1467 = vrot.lane.b32.xlu0 %v1460_v13, %s2128_s28  ;;  %v1974_v15 = vpop.f32.mrb[21].mxu0 }
 0x606   : > { %v1463_v16 = vpop.f32.mrb[22].mxu0 }
 0x607   : > { %v1975_v17 = vpop.f32.mrb[23].mxu0 }
 0x63e   : > { %v1220_v18 = vpop.permute.xlu0 %1219 }
 0x63f   : > { %1223 = vst.msk [vmem:[#allocation3] sm:$0xff] %vm1222_vm12, %v1220_v18 }
 0x66f   : > { %v1344_v6 = vpop.permute.xlu0 %1343 }
 0x670   : > { %1347 = vst.msk [vmem:[#allocation3] sm:$0xff] %vm1346_vm13, %v1344_v6 }
 0x677   : > { %v1468_v14 = vpop.permute.xlu0 %1467 }
 0x678   : > { %1471 = vst.msk [vmem:[#allocation3] sm:$0xff] %vm1470_vm14, %v1468_v14 }
 0x67f   : > { %v1472_v19 = vld [vmem:[#allocation3] sm:$0xff] }
 0x680   : > { %v1473_v20 = vpack.c.bf16 %v1472_v19, %v1472_v19 }
 0x682   : > { %1981 = vmatmul.mubr.msk.bf16.vlgmr.msra.gmra.mrb[16].mxu1 %vm603_vm0, %v1473_v20 }
 0x683   : > { %2000 = vmatprep.mubr.msk.bf16.mxu1 %vm2113_vm1, %v2112_v8  ;;  %1993 = vmatpush3.bf16.msra.mxu1 %v2058_v34 }
 0x684   : > { %1994 = vmatprep.subr.bf16.mxu1 %v2112_v8 }
 0x687   : > { %1995 = vmatpush3.bf16.msra.mxu1 %v2059_v35 }
 0x688   : > { %1996 = vmatprep.subr.bf16.mxu1 %v2112_v8 }
 0x68b   : > { %1997 = vmatpush3.bf16.msra.mxu1 %v2060_v52 }
 0x68c   : > { %1998 = vmatprep.subr.bf16.mxu1 %v2112_v8 }
 0x68f   : > { %1999 = vmatpush3.bf16.msra.mxu1 %v2061_v53 }
 0x755   : > { %v1528_v21 = vpop.f32.mrb[16].mxu1 }
 0x756   : > { %v1534_v23 = vadd.f32 %v1528_v21, %v2246_v0  ;;  %v1982_v24 = vpop.f32.mrb[17].mxu1  ;;  %v2057_v0 = vld [vmem:[%s2438_s11 + $0x8] sm:$0xff]  }
 0x757   : > { %v1531_v25 = vpop.f32.mrb[18].mxu1  ;;  %1987 = vmatpush3.bf16.msra.mxu0 %v2057_v0 }
 0x758   : > { %v1542_v26 = vadd.f32 %v1868_v22, %v1534_v23  ;;  %v1983_v27 = vpop.f32.mrb[19].mxu1 }
 0x75a   : > { %v1545_v38 = vsel %vm603_vm0, %v1542_v26, 0.0 }
 0x75b   : > { %1546 = vadd.xlane.f32.xlu0 %v1545_v38 }
 0x7e8   : > { %v1547_v28 = vpop.xlane.xlu0 %1546 }
 0x7e9   : > { %v1549_v29 = vmul.f32 0.03125, %v1547_v28 }
 0x7eb   : > { %v1550_v30 = vsub.f32 %v1542_v26, %v1549_v29 }
 0x7ed   : > { %v1551_v31 = vmul.f32 %v1550_v30, %v1550_v30  ;;  %v1563_v47 = vmul.f32 %v1869_v46, %v1550_v30 }
 0x7ef   : > { %v1552_v32 = vsel %vm603_vm0, %v1551_v31, 0.0 }
 0x7f0   : > { %1553 = vadd.xlane.f32.xlu1 %v1552_v32 }
 0x87d   : > { %v1554_v36 = vpop.xlane.xlu1 %1553 }
 0x87e   : > { %v1556_v37 = vmul.f32 0.032258064, %v1554_v36 }
 0x880   : > { %2084 = vrsqrt.f32 %v1556_v37  ;;  %vm1566_vm15 = vcmp.eq.f32.partialorder %v1556_v37, inf  ;;  %v1569_v41 = vand.u32 2147483648, %v1556_v37  ;;  %vm1568_vm1 = vcmp.eq.f32.partialorder %v1556_v37, 0.0 }
 0x88a   : > { %v2085_v40 = vpop.eup %2084 }
 0x88b   : > { %v1565_v39 = vmul.f32 %v2085_v40, %v1556_v37 }
 0x88d   : > { %v1567_v43 = vsel %vm1566_vm15, %v1556_v37, %v1565_v39 }
 0x88e   : > { %v1570_v44 = vsel %vm1568_vm1, %v1569_v41, %v1567_v43 }
 0x88f   : > { %v1571_v45 = vadd.f32 1e-06, %v1570_v44 }
 0x891   : > { %2086 = vrcp.f32 %v1571_v45 }
 0x89b   : > { %v2087_v42 = vpop.eup %2086 }
 0x89c   : > { %v1573_v49 = vmul.f32 %v2087_v42, %v1563_v47 }
 0x89e   : > { %v1580_v50 = vadd.f32 %v1870_v48, %v1573_v49 }
 0x8a0   : > { %v1581_v51 = vpack.c.bf16 %v1580_v50, %v1580_v50 }
 0x8a2   : > { %1989 = vmatmul.mubr.msk.bf16.vlgmr.msra.gmra.mrb[24].mxu0 %vm603_vm0, %v1581_v51 }
 0x975   : > { %v1642_v55 = vpop.f32.mrb[24].mxu0 }
 0x976   : > { %v1643_v56 = vadd.f32 %v1871_v54, %v1642_v55  ;;  %v1990_v57 = vpop.f32.mrb[25].mxu0 }
 0x977   : > { %v1645_v58 = vpop.f32.mrb[26].mxu0 }
 0x978   : > { %v1648_v59 = vmax.f32 %v1643_v56, 0.0  ;;  %v1991_v60 = vpop.f32.mrb[27].mxu0 }
 0x97a   : > { %v1649_v61 = vpack.c.bf16 %v1648_v59, %v1648_v59 }
 0x97c   : > { %2001 = vmatmul.mubr.msk.bf16.vlgmr.msra.gmra.mrb[20].mxu1 %vm1682_vm2, %v1649_v61 }
 0xa4f   : > { %v1720_v8 = vpop.f32.mrb[20].mxu1 }
 0xa50   : > { %v1726_v63 = vadd.f32 %v1720_v8, %v1542_v26  ;;  %v2002_v1 = vpop.f32.mrb[21].mxu1 }
 0xa51   : > { %v1723_v2 = vpop.f32.mrb[22].mxu1 }
 0xa52   : > { %v1734_v3 = vadd.f32 %v1880_v62, %v1726_v63  ;;  %v2003_v4 = vpop.f32.mrb[23].mxu1 }
 0xa54   : > { %1735 = vst.msk [vmem:[%s594_s27] sm:$0xff] %vm603_vm0, %v1734_v3 }
 0xa55 PF: > { %s27_s26 = sadd.s32 1, %s2110_s26   ;;  %s2449_s24 = smov %s2106_s25 }
 0xa56   : > { %p24_p5 = scmp.ge.s32.totalorder %s27_s26, 4   ;;  %s2450_s25 = smov %s2452_s15 }
 0xa58   :  { %26 = sbr.rel (!%p24_p5) target bundleno = 3 (0x3), region = 131 }

// kernel: multi_representation_transformer_forward.3
= control target key start
LH: loop header
LB: loop body
LE: loop exit
PB: predicated region body
PF: predicated region fallthrough
CT: control target
= control target key end

     0   :  { %s2651_s0 = inlined_call_operand.vmem [shape: f32[2,8,32], index: 0, kind: input, shape index: {}]   ;;  %s2652_s1 = inlined_call_operand.vmem [shape: f32[2,8,3], index: 1, kind: input, shape index: {}]   ;;  %s2653_s2 = inlined_call_operand.vmem [shape: f32[2,1,8], index: 2, kind: input, shape index: {}]   ;;  %s2654_s3 = inlined_call_operand.vmem [shape: f32[1,32], index: 3, kind: input, shape index: {}]   ;;  %s2655_s4 = inlined_call_operand.vmem [shape: f32[1,32], index: 4, kind: input, shape index: {}]   ;;  %s2656_s5 = inlined_call_operand.vmem [shape: bf16[32,96], index: 5, kind: input, shape index: {}]   ;;  %s2657_s6 = inlined_call_operand.vmem [shape: f32[1,96], index: 6, kind: input, shape index: {}]   ;;  %s2658_s7 = inlined_call_operand.vmem [shape: bf16[32,32], index: 7, kind: input, shape index: {}]   ;;  %s2659_s8 = inlined_call_operand.vmem [shape: f32[1,32], index: 8, kind: input, shape index: {}]   ;;  %s2660_s9 = inlined_call_operand.vmem [shape: f32[1,32], index: 9, kind: input, shape index: {}]   ;;  %s2661_s10 = inlined_call_operand.vmem [shape: f32[1,32], index: 10, kind: input, shape index: {}]   ;;  %s2662_s11 = inlined_call_operand.vmem [shape: bf16[32,64], index: 11, kind: input, shape index: {}]   ;;  %s2663_s12 = inlined_call_operand.vmem [shape: f32[1,64], index: 12, kind: input, shape index: {}]   ;;  %s2664_s13 = inlined_call_operand.vmem [shape: bf16[64,32], index: 13, kind: input, shape index: {}]   ;;  %s2665_s14 = inlined_call_operand.vmem [shape: f32[1,32], index: 14, kind: input, shape index: {}]   ;;  %s2666_s15 = inlined_call_operand.vmem [shape: f32[1,32], index: 15, kind: input, shape index: {}]   ;;  %s2667_s16 = inlined_call_operand.vmem [shape: f32[1,32], index: 16, kind: input, shape index: {}]   ;;  %s2668_s17 = inlined_call_operand.hbm [shape: f32[2,8,32], index: 17, kind: output, shape index: {}]  }
   0x1   :  { %2671 = sst [smem:[#allocation10_spill]] %s2651_s0 }
   0x2   :  { %2672 = sst [smem:[#allocation11_spill]] %s2652_s1 }
   0x3   :  { %2673 = sst [smem:[#allocation12_spill]] %s2653_s2 }
   0x4   :  { %2674 = sst [smem:[#allocation13_spill]] %s2654_s3 }
   0x5   :  { %2675 = sst [smem:[#allocation14_spill]] %s2655_s4 }
   0x6   :  { %2676 = sst [smem:[#allocation15_spill]] %s2656_s5 }
   0x7   :  { %22 = vsyncpa [#allocation5], 0 }
   0x8   :  { %24 = vsyncpa [#allocation5 + $0x1], 0  ;;  %s2357_s24 = smov 0   ;;  %s2359_s25 = smov 0  }
   0x9   :  { %s2361_s26 = smov 0   ;;  %s2363_s27 = smov 0  }
   0xa   :  { %s2365_s28 = smov 0   ;;  %s2367_s29 = smov 0  }
   0xb LB: > { %2677 = sst [smem:[#allocation7_spill]] %s2243_s28  ;;  %s1876_s0 = sadd.s32 4294967295, %s2247_s29   ;;  %s2247_s29 = sphi %s2367_s29, %s30_s29   ;;  %s2243_s28 = sphi %s2365_s28, %s2690_s28   ;;  %s2239_s27 = sphi %s2363_s27, %s2689_s27   ;;  %s2235_s26 = sphi %s2361_s26, %s2693_s26   ;;  %s2231_s25 = sphi %s2359_s25, %s2692_s25   ;;  %s2227_s24 = sphi %s2357_s24, %s2691_s24  }
   0xc   : > { %s1877_s30 = sadd.s32 4294967294, %s2247_s29   ;;  %s42_s18 = sadd.s32 1, %s2243_s28 }
   0xd   : > { %s423_s19 = sadd.s32 1, %s2235_s26  ;;  %p44_p0 = scmp.ge.s32.totalorder %s42_s18, 2 }
   0xe   : > { %p433_p1 = scmp.ne.s32.totalorder %s2235_s26, %s2231_s25  ;;  %p434_p2 = scmp.eq.s32.totalorder %s1876_s0, 1 }
   0xf   : > { %p439_p3 = scmp.ne.s32.totalorder %s2231_s25, %s2227_s24  ;;  %s2695_s18 = smov (%p44_p0, %s42_s18), 0 }
  0x10   : > { %2678 = sst [smem:[#allocation8_spill]] %s2695_s18  ;;  %p2397_p4 = por %p434_p2, %p433_p1 }
  0x11   : > { %p440_p5 = scmp.eq.s32.totalorder %s1877_s30, 1  ;;  %s418_s20 = ssub.s32 %s2243_s28, %s2695_s18 }
  0x12   : > { %p1880_p6 = scmp.ge.s32.totalorder %s2247_s29, 1  ;;  %p421_p7 = scmp.eq.s32.totalorder %s418_s20, 0 }
  0x13   : > { %p2404_p8 = por %p440_p5, %p439_p3  ;;  %p520_p9 = scmp.lt.s32.totalorder %s2247_s29, 3 }
  0x14   : > { %s2410_s22 = scalar_select %p421_p7, %s2235_s26, %s423_s19  }
  0x15   : > { %p521_p10 = pnand %p1880_p6, %p520_p9 }
  0x16   : > { %2681 = sst [smem:[#allocation9_spill]] %s2410_s22  ;;  %p578_p11 = scmp.lt.s32.totalorder (!%p521_p10), %s2239_s27, 1  ;;  %vm597_vm0 = vcmask (!%p521_p10), 261120   ;;  %v2249_v8 = vmov (!%p521_p10), 0.0   ;;  %vm2250_vm1 = vmmov (!%p521_p10), 0   ;;  %vm715_vm4 = vcmask (!%p521_p10), 23552  }
  0x17   : > { %524 = sbr.rel (%p521_p10) target bundleno = 3000 (0xbb8), region = 88  ;;  %s2682_s18 = sld [smem:[#allocation10_spill]] (!%p521_p10)  ;;  %1961 = vmatprep.subr.bf16.mxu0 (!%p521_p10), %v2249_v8  ;;  %1965 = vmatprep.mubr.msk.bf16.mxu0 (!%p521_p10), %vm2250_vm1, %v2249_v8  ;;  %v1886_v28 = vld [vmem:[%s2657_s6] ss:$0 sm:$0xff] (!%p521_p10)  ;;  %vm703_vm5 = vcmask (!%p521_p10), 257024   ;;  %vm706_vm6 = vcmask (!%p521_p10), 781568   ;;  %v831_v59 = vlaneseq (!%p521_p10) }
  0x18   : > { %s2683_s5 = sld [smem:[#allocation15_spill]] (!%p521_p10)  ;;  %1974 = vmatprep.subr.bf16.mxu1 (!%p521_p10), %v2249_v8  ;;  %1976 = vmatprep.mubr.msk.bf16.mxu1 (!%p521_p10), %vm2250_vm1, %v2249_v8  ;;  %s2684_s3 = sld [smem:[#allocation13_spill]] (!%p521_p10)  ;;  %vm985_vm7 = vcmask (!%p521_p10), 64512   ;;  %vm1049_vm11 = vcmask (!%p521_p10), 1043456   ;;  %vm1216_vm12 = vcmask (!%p521_p10), 130112   ;;  %vm1340_vm13 = vcmask (!%p521_p10), 195712  }
  0x19   : > { %s2685_s4 = sld [smem:[#allocation14_spill]] (!%p521_p10)  ;;  %s2253_s19 = smov (!%p521_p10), 88   ;;  %v832_v60 = vshrl.u32 (!%p521_p10), %v831_v59, 7  ;;  %vm1464_vm14 = vcmask (!%p521_p10), 261312  }
  0x1a   : > { %s2257_s30 = smov (!%p521_p10), 104   ;;  %s2258_s20 = smov (!%p521_p10), 56  }
  0x1b   : > { %v833_v61 = vsub.s32 (!%p521_p10), 0, %v832_v60  ;;  %s2687_s2 = sld [smem:[#allocation12_spill]] (!%p521_p10) }
  0x1e   : > { %s2414_s23 = scalar_select %p578_p11, %s2239_s27, 1  ;;  %v2122_v7 = vld [vmem:[%s2683_s5] sm:$0xff]   ;;  %v2123_v9 = vld [vmem:[%s2683_s5 + $0x8] sm:$0xff]  }
  0x1f   : > { %1962 = vmatpush3.bf16.msra.mxu0 %v2122_v7  ;;  %v1884_v18 = vld [vmem:[%s2684_s3] ss:$0 sm:$0xff]  ;;  %s2686_s5 = sld [smem:[#allocation11_spill]] }
  0x20   : > { %s1882_s0 = sshll.u32 %s2414_s23, 3  ;;  %1963 = vmatprep.subr.bf16.mxu0 %v2249_v8  ;;  %v1885_v21 = vld [vmem:[%s2685_s4] ss:$0 sm:$0xff] }
  0x21   : > { %s581_s28 = scalar_lea.vmem %s2682_s18, %s1882_s0  ;;  %s2255_s18 = smov 112  }
  0x22   : > { %v2422_v0 = vld [vmem:[%s581_s28] sm:$0xff]  ;;  %s2254_s28 = smov 80  }
  0x23   : > { %v598_v1 = vsel %vm597_vm0, %v2422_v0, 0.0  ;;  %1964 = vmatpush3.bf16.msra.mxu0 %v2123_v9 }
  0x24   : > { %599 = vadd.xlane.f32.xlu0 %v598_v1  ;;  %1969 = vmatprep.subr.mxu0 %v2249_v8 }
  0x25   : > { %s585_s22 = scalar_lea.vmem %s2686_s5, %s1882_s0  ;;  %s2251_s5 = smov 120  }
  0x26   : > { %v712_v25 = vld [vmem:[%s585_s22] sm:$0xff]  ;;  %s2252_s0 = smov 96   ;;  %s2256_s22 = smov 72  }
  0x27   : > { %v719_v26 = vmul.f32 %v712_v25, %v712_v25 }
  0x29   : > { %v720_v27 = vsel %vm715_vm4, %v719_v26, 0.0 }
  0xb1   : > { %v600_v2 = vpop.xlane.xlu0 %599 }
  0xb2   : > { %v602_v3 = vmul.f32 0.03125, %v600_v2 }
  0xb4   : > { %v603_v4 = vsub.f32 %v2422_v0, %v602_v3 }
  0xb6   : > { %v604_v5 = vmul.f32 %v603_v4, %v603_v4  ;;  %v616_v19 = vmul.f32 %v1884_v18, %v603_v4 }
  0xb8   : > { %v605_v6 = vsel %vm597_vm0, %v604_v5, 0.0 }
  0xb9   : > { %606 = vadd.xlane.f32.xlu0 %v605_v6 }
 0x146   : > { %v607_v10 = vpop.xlane.xlu0 %606 }
 0x147   : > { %v609_v11 = vmul.f32 0.032258064, %v607_v10 }
 0x149   : > { %2139 = vrsqrt.f32 %v609_v11  ;;  %vm619_vm2 = vcmp.eq.f32.partialorder %v609_v11, inf  ;;  %v622_v14 = vand.u32 2147483648, %v609_v11  ;;  %vm621_vm3 = vcmp.eq.f32.partialorder %v609_v11, 0.0 }
 0x153   : > { %v2140_v12 = vpop.eup %2139 }
 0x154   : > { %v618_v13 = vmul.f32 %v2140_v12, %v609_v11 }
 0x156   : > { %v620_v15 = vsel %vm619_vm2, %v609_v11, %v618_v13  ;;  %v2259_v11 = vmov 1966171168   ;;  %vm1676_vm2 = vcmask 523264  }
 0x157   : > { %v623_v16 = vsel %vm621_vm3, %v622_v14, %v620_v15  ;;  %v853_v12 = vunpack.c.l.s4 %v2259_v11 }
 0x158   : > { %v624_v17 = vadd.f32 1e-06, %v623_v16 }
 0x159   : > { %v854_v13 = vunpack.c.0.s8 %v853_v12 }
 0x15a   : > { %2141 = vrcp.f32 %v624_v17 }
 0x164   : > { %v2142_v20 = vpop.eup %2141 }
 0x165   : > { %v626_v22 = vmul.f32 %v2142_v20, %v616_v19  ;;  %v857_v19 = vsub.s32 %v854_v13, %v832_v60 }
 0x167   : > { %v633_v23 = vadd.f32 %v1885_v21, %v626_v22 }
 0x169   : > { %v634_v24 = vpack.c.bf16 %v633_v23, %v633_v23 }
 0x16b   : > { %1966 = vmatmul.mubr.msk.bf16.vlgmr.msra.gmra.mrb[0].mxu0 %vm597_vm0, %v634_v24 }
 0x16c   : > { %1971 = vmatprep.mubr.msk.f32.mxu0 %vm2250_vm1, %v2249_v8  ;;  %1970 = vmatpush3.xpose.msk.msra.mxu0 %vm715_vm4, %v712_v25 }
 0x16d   : > { %1980 = vmatprep.subr.bf16.mxu0 %v2249_v8 }
 0x173   : > { %1972 = vmatmul.mubr.msk.f32.vlgmr.msra.gmra.mrb[4].mxu0 %vm715_vm4, %v712_v25 }
 0x174   : > { %1982 = vmatprep.mubr.msk.bf16.mxu0 %vm2250_vm1, %v2249_v8 }
 0x23e   : > { %v695_v29 = vpop.f32.mrb[0].mxu0 }
 0x23f   : > { %v696_v30 = vadd.f32 %v1886_v28, %v695_v29  ;;  %v1967_v31 = vpop.f32.mrb[1].mxu0 }
 0x240   : > { %v698_v32 = vpop.f32.mrb[2].mxu0 }
 0x241   : > { %v701_v33 = vmul.f32 0.35355338, %v696_v30  ;;  %v1968_v34 = vpop.f32.mrb[3].mxu0  ;;  %v705_v36 = vpack.c.bf16 %v696_v30, %v696_v30 }
 0x243   : > { %v702_v35 = vpack.c.bf16 %v701_v33, %v701_v33 }
 0x245   : > { %704 = vst.msk [vmem:[#allocation2] sm:$0xf] %vm703_vm5, %v702_v35 }
 0x246   : > { %707 = vst.msk [vmem:[#allocation2] sm:$0xf] %vm706_vm6, %v705_v36  ;;  %v795_v57 = vpop.f32.mrb[4].mxu0 }
 0x247   : > { %v1973_v58 = vpop.f32.mrb[5].mxu0  ;;  %v836_v2 = vmul.f32 2.0, %v795_v57 }
 0x24d   : > { %v2124_v37 = vld [vmem:[#allocation2] ss:$0 sps:$4 sm:$0xff]  }
 0x24e   : > { %v2462_v38 = vld [vmem:[#allocation2] ss:$0 sps:$4 sm:$0xff]   ;;  %1099 = vrot.lane.b32.xlu0 %v2124_v37, %s2251_s5 }
 0x24f   : > { %925 = vrot.lane.b32.xlu1 %v2462_v38, %s2252_s0  ;;  %v2126_v39 = vld [vmem:[#allocation2] ss:$0 sps:$4 sm:$0xff]  }
 0x250   : > { %v2465_v40 = vld [vmem:[#allocation2] ss:$0 sps:$4 sm:$0xff]  }
 0x251   : > { %v2128_v41 = vld [vmem:[#allocation2] ss:$0 sps:$4 sm:$0xff]  }
 0x252   : > { %v2468_v42 = vld [vmem:[#allocation2] ss:$0 sps:$4 sm:$0xff]  }
 0x253   : > { %1104 = vrot.lane.b32.xlu1 %v2126_v39, %s2253_s19  ;;  %v2130_v43 = vld [vmem:[#allocation2] ss:$0 sps:$4 sm:$0xff]   ;;  %s588_s19 = scalar_lea.vmem %s2687_s2, %s2414_s23  ;;  %s2260_s23 = smov 64  }
 0x254   : > { %v920_v47 = vld [vmem:[#allocation2] sm:$0xf] }
 0x255   : > { %v846_v23 = vld [vmem:[%s588_s19] sm:$0x1]  ;;  %s2264_s19 = smov 16  }
 0x256   : > { %vm847_vm10 = vcmp.gt.f32.partialorder %v846_v23, 0.0 }
 0x257   : > { %1228 = vrot.lane.b32.xlu1 %v2465_v40, %s2254_s28  ;;  %s2261_s28 = smov 48  }
 0x25b   : > { %1223 = vrot.lane.b32.xlu1 %v2128_v41, %s2255_s18  ;;  %s2262_s18 = smov 40  }
 0x25f   : > { %1352 = vrot.lane.b32.xlu1 %v2468_v42, %s2256_s22  ;;  %s2263_s22 = smov 8  }
 0x263   : > { %1347 = vrot.lane.b32.xlu1 %v2130_v43, %s2257_s30 }
 0x26d   : > { %717 = vadd.xlane.f32.xlu0 %v720_v27 }
 0x287   : > { %721 = vadd.xlane.f32.xlu1 %v720_v27 }
 0x2c0   : > { %v1100_v50 = vpop.permute.xlu0 %1099 }
 0x2c1   : > { %v926_v44 = vpop.permute.xlu1 %925 }
 0x2c2   : > { %v990_v45 = vsel %vm985_vm7, %v926_v44, 0 }
 0x2c3   : > { %1975 = vmatpush3.bf16.xpose.msra.mxu1 %v990_v45 }
 0x2c4   : > { %1986 = vmatprep.subr.bf16.mxu1 %v2249_v8 }
 0x2c5   : > { %v1105_v46 = vpop.permute.xlu1 %1104 }
 0x2c6   : > { %v1110_v48 = vsel %vm985_vm7, %v1105_v46, 0 }
 0x2c9   : > { %v1229_v49 = vpop.permute.xlu1 %1228 }
 0x2ca   : > { %1977 = vmatmul.mubr.msk.bf16.vlgmr.msra.gmra.mrb[0].mxu1 %vm985_vm7, %v920_v47  ;;  %v1234_v52 = vsel %vm985_vm7, %v1229_v49, 0 }
 0x2cb   : > { %1987 = vmatpush3.bf16.xpose.msra.mxu1 %v1110_v48  ;;  %1988 = vmatprep.mubr.msk.bf16.mxu1 %vm2250_vm1, %v2249_v8 }
 0x2cc   : > { %1998 = vmatprep.subr.bf16.mxu1 %v2249_v8 }
 0x2cd   : > { %v1224_v51 = vpop.permute.xlu1 %1223 }
 0x2d1   : > { %v1353_v53 = vpop.permute.xlu1 %1352 }
 0x2d2   : > { %1989 = vmatmul.mubr.msk.bf16.vlgmr.msra.gmra.mrb[4].mxu1 %vm985_vm7, %v1100_v50  ;;  %v1358_v54 = vsel %vm985_vm7, %v1353_v53, 0 }
 0x2d3   : > { %1999 = vmatpush3.bf16.xpose.msra.mxu1 %v1234_v52  ;;  %2000 = vmatprep.mubr.msk.bf16.mxu1 %vm2250_vm1, %v2249_v8 }
 0x2d4   : > { %2010 = vmatprep.subr.bf16.mxu1 %v2249_v8 }
 0x2d5   : > { %v1348_v55 = vpop.permute.xlu1 %1347 }
 0x2da   : > { %2001 = vmatmul.mubr.msk.bf16.vlgmr.msra.gmra.mrb[8].mxu1 %vm985_vm7, %v1224_v51 }
 0x2db   : > { %2011 = vmatpush3.bf16.xpose.msra.mxu1 %v1358_v54  ;;  %2012 = vmatprep.mubr.msk.bf16.mxu1 %vm2250_vm1, %v2249_v8 }
 0x2dc   : > { %2022 = vmatprep.subr.bf16.mxu1 %v2249_v8 }
 0x2e2   : > { %2013 = vmatmul.mubr.msk.bf16.vlgmr.msra.gmra.mrb[12].mxu1 %vm985_vm7, %v1348_v55 }
 0x2e3   : > { %2026 = vmatprep.mubr.msk.bf16.mxu1 %vm2250_vm1, %v2249_v8 }
 0x2fa   : > { %v718_v63 = vpop.xlane.xlu0 %717 }
 0x314   : > { %v722_v56 = vpop.xlane.xlu1 %721 }
 0x315   : > { %799 = vxpose.xlu1.b32.start.end [1/1] (short) (narrow) %v722_v56, 8 }
 0x333   : > { %1164 = vrot.lane.b32.xlu1 %v2126_v39, %s2258_s20  ;;  %s575_s20 = sand.u32 1, %s2231_s25  }
 0x334   : > { %s1881_s5 = sshll.u32 %s575_s20, 3  ;;  %s1767_s0 = scalar_lea.sflag [#allocation5], %s575_s20 }
 0x395   : > { %v815_v62 = vpop.trf.xlu1 }
 0x396   : > { %v834_v1 = vrot.slane %v815_v62, %v833_v61 }
 0x398   : > { %v835_v3 = vadd.f32 %v834_v1, %v718_v63 }
 0x39a   : > { %v837_v4 = vsub.f32 %v835_v3, %v836_v2 }
 0x39c   : > { %v838_v5 = vmax.f32 %v837_v4, 0.0 }
 0x39d   : > { %v2491_v6 = vpop.f32.mrb[0].mxu1 }
 0x39e   : > { %2143 = vrsqrt.f32 %v838_v5  ;;  %v1978_v7 = vpop.f32.mrb[1].mxu1  ;;  %vm841_vm8 = vcmp.eq.f32.partialorder %v838_v5, inf  ;;  %v844_v21 = vand.u32 2147483648, %v838_v5  ;;  %vm843_vm9 = vcmp.eq.f32.partialorder %v838_v5, 0.0 }
 0x39f   : > { %v1029_v9 = vpop.f32.mrb[2].mxu1 }
 0x3a0   : > { %v1979_v10 = vpop.f32.mrb[3].mxu1 }
 0x3a5   : > { %v1146_v14 = vpop.f32.mrb[4].mxu1 }
 0x3a6   : > { %v1990_v15 = vpop.f32.mrb[5].mxu1 }
 0x3a7   : > { %v1149_v16 = vpop.f32.mrb[6].mxu1 }
 0x3a8   : > { %v2144_v17 = vpop.eup %2143  ;;  %v1991_v18 = vpop.f32.mrb[7].mxu1 }
 0x3a9   : > { %v840_v20 = vmul.f32 %v2144_v17, %v838_v5 }
 0x3ab   : > { %v842_v22 = vsel %vm841_vm8, %v838_v5, %v840_v20 }
 0x3ac   : > { %v845_v24 = vsel %vm843_vm9, %v844_v21, %v842_v22 }
 0x3ad   : > { %v851_v25 = vcombine.high %v845_v24, %v845_v24  ;;  %v858_v26 = vrot.slane %v845_v24, %v857_v19  ;;  %v1270_v27 = vpop.f32.mrb[8].mxu1 }
 0x3ae   : > { %v2002_v28 = vpop.f32.mrb[9].mxu1 }
 0x3af   : > { %v865_v29 = vrot.slane %v851_v25, %v857_v19  ;;  %v866_v30 = vcombine.high %v858_v26, %v858_v26  ;;  %v874_v31 = vrot.slane %v858_v26, %v857_v19  ;;  %v1273_v32 = vpop.f32.mrb[10].mxu1 }
 0x3b0   : > { %v2003_v33 = vpop.f32.mrb[11].mxu1 }
 0x3b1   : > { %v867_v34 = vcombine.high %v865_v29, %v865_v29  ;;  %v881_v35 = vrot.slane %v865_v29, %v857_v19  ;;  %v888_v36 = vrot.slane %v866_v30, %v857_v19  ;;  %v896_v37 = vcombine.high %v874_v31, %v874_v31 }
 0x3b2   : > { %v908_v39 = vsel %vm847_vm10, %v874_v31, -1e+09 }
 0x3b3   : > { %v895_v41 = vrot.slane %v867_v34, %v857_v19  ;;  %v897_v43 = vcombine.high %v881_v35, %v881_v35  ;;  %v898_v44 = vcombine.high %v888_v36, %v888_v36  ;;  %v909_v45 = vsel %vm847_vm10, %v888_v36, -1e+09 }
 0x3b4   : > { %v910_v46 = vsel %vm847_vm10, %v896_v37, -1e+09  ;;  %v912_v47 = vsel %vm847_vm10, %v881_v35, -1e+09  ;;  %v935_v48 = vcombine.low %v908_v39, %v909_v45 }
 0x3b5   : > { %v899_v49 = vcombine.high %v895_v41, %v895_v41  ;;  %v911_v50 = vsel %vm847_vm10, %v898_v44, -1e+09  ;;  %v913_v51 = vsel %vm847_vm10, %v895_v41, -1e+09  ;;  %v914_v52 = vsel %vm847_vm10, %v897_v43, -1e+09  ;;  %v1165_v43 = vpop.permute.xlu1 %1164 }
 0x3b6   : > { %v936_v53 = vcombine.low %v910_v46, %v911_v50  ;;  %v937_v54 = vcombine.low %v912_v47, %v913_v51  ;;  %v1394_v55 = vpop.f32.mrb[12].mxu1  ;;  %v945_v59 = vrot.slane %v935_v48, %v857_v19  ;;  %v1170_v46 = vsel %vm1049_vm11, %v1165_v43, 0 }
 0x3b7   : > { %v915_v56 = vsel %vm847_vm10, %v899_v49, -1e+09  ;;  %v2014_v57 = vpop.f32.mrb[13].mxu1 }
 0x3b8   : > { %v938_v58 = vcombine.low %v914_v52, %v915_v56  ;;  %v952_v60 = vrot.slane %v936_v53, %v857_v19  ;;  %v1397_v61 = vpop.f32.mrb[14].mxu1  ;;  %v959_v63 = vrot.slane %v937_v54, %v857_v19 }
 0x3b9   : > { %v2015_v62 = vpop.f32.mrb[15].mxu1 }
 0x3ba   : > { %v966_v1 = vrot.slane %v938_v58, %v857_v19  ;;  %v967_v2 = vcombine.low %v945_v59, %v952_v60 }
 0x3bc   : > { %v968_v3 = vcombine.low %v959_v63, %v966_v1  ;;  %v975_v4 = vrot.slane %v967_v2, %v857_v19 }
 0x3be   : > { %v982_v5 = vrot.slane %v968_v3, %v857_v19 }
 0x3c0   : > { %v983_v7 = vcombine.low %v975_v4, %v982_v5  ;;  %v2131_v5 = vld [vmem:[%s2658_s7] sm:$0xff]  }
 0x3c1   : > { %2023 = vmatpush3.bf16.msra.mxu1 %v2131_v5 }
 0x3c2   : > { %v1027_v9 = vadd.f32 %v2491_v6, %v983_v7  ;;  %v1147_v10 = vadd.f32 %v1146_v14, %v983_v7  ;;  %v1271_v11 = vadd.f32 %v1270_v27, %v983_v7  ;;  %v1395_v12 = vadd.f32 %v1394_v55, %v983_v7  ;;  %v2132_v7 = vld [vmem:[%s2658_s7 + $0x8] sm:$0xff]   ;;  %2024 = vmatprep.subr.bf16.mxu1 %v2249_v8 }
 0x3c4   : > { %v1032_v13 = vsel %vm985_vm7, %v1027_v9, -inf  ;;  %v1152_v15 = vsel %vm985_vm7, %v1147_v10, -inf  ;;  %v1276_v16 = vsel %vm985_vm7, %v1271_v11, -inf  ;;  %v1400_v17 = vsel %vm985_vm7, %v1395_v12, -inf }
 0x3c5   : > { %1033 = vmax.xlane.f32.xlu0 %v1032_v13  ;;  %2025 = vmatpush3.bf16.msra.mxu1 %v2132_v7 }
 0x3c6   : > { %2038 = vmatprep.subr.bf16.mxu1 %v2249_v8 }
 0x3c9   : > { %1153 = vmax.xlane.f32.xlu0 %v1152_v15 }
 0x3cd   : > { %1277 = vmax.xlane.f32.xlu0 %v1276_v16 }
 0x3d1   : > { %1401 = vmax.xlane.f32.xlu0 %v1400_v17 }
 0x3e7   : > { %1044 = vrot.lane.b32.xlu0 %v2462_v38, %s2260_s23  ;;  %s2265_s23 = smov 24  }
 0x452   : > { %v1034_v18 = vpop.xlane.xlu0 %1033 }
 0x453   : > { %v1035_v6 = vsub.f32 %v1027_v9, %v1034_v18 }
 0x455   : > { %v1036_v14 = vmul.f32 1.442695, %v1035_v6 }
 0x456   : > { %v1154_v19 = vpop.xlane.xlu0 %1153 }
 0x457   : > { %2145 = vpow2.f32 %v1036_v14  ;;  %v1155_v20 = vsub.f32 %v1147_v10, %v1154_v19 }
 0x459   : > { %v1156_v21 = vmul.f32 1.442695, %v1155_v20 }
 0x45a   : > { %v1278_v22 = vpop.xlane.xlu0 %1277 }
 0x45b   : > { %2147 = vpow2.f32 %v1156_v21  ;;  %v1279_v29 = vsub.f32 %v1271_v11, %v1278_v22  ;;  %v1910_v22 = vld [vmem:[%s2659_s8] ss:$0 sm:$0xff] }
 0x45d   : > { %v1280_v30 = vmul.f32 1.442695, %v1279_v29 }
 0x45e   : > { %v1402_v23 = vpop.xlane.xlu0 %1401 }
 0x45f   : > { %v1403_v31 = vsub.f32 %v1395_v12, %v1402_v23  ;;  %2149 = vpow2.f32 %v1280_v30 }
 0x461   : > { %v2146_v24 = vpop.eup %2145  ;;  %v1404_v32 = vmul.f32 1.442695, %v1403_v31 }
 0x462   : > { %v1045_v25 = vpop.permute.xlu0 %1044  ;;  %v1038_v26 = vsel %vm985_vm7, %v2146_v24, 0.0 }
 0x463   : > { %v1051_v27 = vsel %vm1049_vm11, %v1045_v25, 0  ;;  %1039 = vadd.xlane.f32.xlu0 %v1038_v26  ;;  %2151 = vpow2.f32 %v1404_v32 }
 0x464   : > { %1981 = vmatpush3.bf16.msra.mxu0 %v1051_v27 }
 0x465   : > { %v2148_v38 = vpop.eup %2147  ;;  %1992 = vmatprep.subr.bf16.mxu0 %v2249_v8 }
 0x466   : > { %v1158_v28 = vsel %vm985_vm7, %v2148_v38, 0.0 }
 0x467   : > { %1159 = vadd.xlane.f32.xlu0 %v1158_v28 }
 0x469   : > { %v2150_v33 = vpop.eup %2149 }
 0x46a   : > { %v1282_v34 = vsel %vm985_vm7, %v2150_v33, 0.0 }
 0x46d   : > { %v2152_v35 = vpop.eup %2151 }
 0x46e   : > { %v1406_v36 = vsel %vm985_vm7, %v2152_v35, 0.0 }
 0x47d   : > { %1288 = vrot.lane.b32.xlu0 %v2465_v40, %s2261_s28 }
 0x49c   : > { %1283 = vadd.xlane.f32.xlu0 %v1282_v34  ;;  %v2135_v34 = vld [vmem:[%s2664_s13] sm:$0xff]  }
 0x4a0   : > { %1407 = vadd.xlane.f32.xlu0 %v1406_v36 }
 0x4b6   : > { %1412 = vrot.lane.b32.xlu0 %v2468_v42, %s2262_s18  ;;  %s1926_s18 = sshll.u32 %s2239_s27, 7  ;;  %s2266_s27 = smov [#allocation4]  }
 0x4b7   : > { %s2603_s4 = scalar_lea.hbm %s2668_s17, %s1926_s18 }
 0x4f0   : > { %v1040_v37 = vpop.xlane.xlu0 %1039 }
 0x4f1   : > { %2153 = vrcp.f32 %v1040_v37 }
 0x4f4   : > { %v1160_v40 = vpop.xlane.xlu0 %1159 }
 0x4f5   : > { %2155 = vrcp.f32 %v1160_v40 }
 0x4f8   : > { %v1289_v42 = vpop.permute.xlu0 %1288 }
 0x4f9   : > { %v1294_v49 = vsel %vm1049_vm11, %v1289_v42, 0 }
 0x4fb   : > { %v2154_v39 = vpop.eup %2153 }
 0x4fc   : > { %v1042_v41 = vmul.f32 %v2154_v39, %v2146_v24 }
 0x4fe   : > { %v1043_v44 = vpack.c.bf16 %v1042_v41, %v1042_v41 }
 0x4ff   : > { %v2156_v45 = vpop.eup %2155 }
 0x500   : > { %1983 = vmatmul.mubr.msk.bf16.vlgmr.msra.gmra.mrb[8].mxu0 %vm985_vm7, %v1043_v44  ;;  %v1162_v47 = vmul.f32 %v2156_v45, %v2148_v38 }
 0x501   : > { %1993 = vmatpush3.bf16.msra.mxu0 %v1170_v46  ;;  %1994 = vmatprep.mubr.msk.bf16.mxu0 %vm2250_vm1, %v2249_v8  ;;  %v1911_v46 = vld [vmem:[%s2660_s9] ss:$0 sm:$0xff] }
 0x502   : > { %2004 = vmatprep.subr.bf16.mxu0 %v2249_v8  ;;  %v1163_v48 = vpack.c.bf16 %v1162_v47, %v1162_v47 }
 0x508   : > { %1995 = vmatmul.mubr.msk.bf16.vlgmr.msra.gmra.mrb[12].mxu0 %vm985_vm7, %v1163_v48  ;;  %v1912_v48 = vld [vmem:[%s2661_s10] ss:$0 sm:$0xff] }
 0x509   : > { %2005 = vmatpush3.bf16.msra.mxu0 %v1294_v49  ;;  %2006 = vmatprep.mubr.msk.bf16.mxu0 %vm2250_vm1, %v2249_v8 }
 0x50a   : > { %2016 = vmatprep.subr.bf16.mxu0 %v2249_v8 }
 0x529   : > { %v1284_v50 = vpop.xlane.xlu0 %1283 }
 0x52a   : > { %2157 = vrcp.f32 %v1284_v50 }
 0x52d   : > { %v1408_v51 = vpop.xlane.xlu0 %1407 }
 0x52e   : > { %2159 = vrcp.f32 %v1408_v51 }
 0x531   : > { %v1413_v54 = vpop.permute.xlu0 %1412 }
 0x532   : > { %v1418_v57 = vsel %vm1049_vm11, %v1413_v54, 0  ;;  %v1913_v54 = vld [vmem:[%s2663_s12] ss:$0 sm:$0xff] }
 0x534   : > { %v2158_v52 = vpop.eup %2157 }
 0x535   : > { %v1286_v53 = vmul.f32 %v2158_v52, %v2150_v33  ;;  %v2133_v33 = vld [vmem:[%s2662_s11] sm:$0xff]   ;;  %v2137_v52 = vld [vmem:[%s2664_s13 + $0x10] sm:$0xff]  }
 0x537   : > { %v1287_v55 = vpack.c.bf16 %v1286_v53, %v1286_v53  ;;  %v2138_v53 = vld [vmem:[%s2664_s13 + $0x18] sm:$0xff]  }
 0x538   : > { %v2160_v56 = vpop.eup %2159 }
 0x539   : > { %2007 = vmatmul.mubr.msk.bf16.vlgmr.msra.gmra.mrb[16].mxu0 %vm985_vm7, %v1287_v55  ;;  %v1410_v58 = vmul.f32 %v2160_v56, %v2152_v35  ;;  %v2136_v35 = vld [vmem:[%s2664_s13 + $0x8] sm:$0xff]  }
 0x53a   : > { %2017 = vmatpush3.bf16.msra.mxu0 %v1418_v57  ;;  %2018 = vmatprep.mubr.msk.bf16.mxu0 %vm2250_vm1, %v2249_v8 }
 0x53b   : > { %2030 = vmatprep.subr.bf16.mxu0 %v2249_v8  ;;  %v1411_v59 = vpack.c.bf16 %v1410_v58, %v1410_v58 }
 0x541   : > { %2019 = vmatmul.mubr.msk.bf16.vlgmr.msra.gmra.mrb[20].mxu0 %vm985_vm7, %v1411_v59 }
 0x542   : > { %2034 = vmatprep.mubr.msk.bf16.mxu0 %vm2250_vm1, %v2249_v8  ;;  %2031 = vmatpush3.bf16.msra.mxu0 %v2133_v33 }
 0x543   : > { %2032 = vmatprep.subr.bf16.mxu0 %v2249_v8 }
 0x5d3   : > { %v1087_v60 = vpop.f32.mrb[8].mxu0 }
 0x5d4   : > { %1093 = vst.msk [vmem:[#allocation3] sm:$0xff] %vm985_vm7, %v1087_v60  ;;  %v1984_v61 = vpop.f32.mrb[9].mxu0 }
 0x5d5   : > { %v1090_v62 = vpop.f32.mrb[10].mxu0 }
 0x5d6   : > { %v1985_v63 = vpop.f32.mrb[11].mxu0 }
 0x5db   : > { %v1206_v1 = vpop.f32.mrb[12].mxu0 }
 0x5dc   : > { %1213 = vrot.lane.b32.xlu0 %v1206_v1, %s2263_s22  ;;  %v1996_v2 = vpop.f32.mrb[13].mxu0  ;;  %s577_s22 = scalar_lea.vmem [#allocation4], %s1881_s5  ;;  %s2173_s5 = sshll.u32 %s2266_s27, 4  ;;  %s2174_s5 = int_to_ptr.vmem [resolvable:$false] %s2173_s5 }
 0x5dd   : > { %v1209_v3 = vpop.f32.mrb[14].mxu0  ;;  %s1781_s30 = sshll.u32 %s577_s22, 4  ;;  %s2605_s30 = int_to_ptr.vmem [resolvable:$true] %s1781_s30 }
 0x5de   : > { %v1997_v4 = vpop.f32.mrb[15].mxu0  ;;  %p2176_p1 = scmp.lt.s32.totalorder %s2605_s30, %s2174_s5 }
 0x60c   : > { %v1330_v9 = vpop.f32.mrb[16].mxu0 }
 0x60d   : > { %1337 = vrot.lane.b32.xlu0 %v1330_v9, %s2264_s19  ;;  %v2008_v10 = vpop.f32.mrb[17].mxu0  ;;  %s2169_s19 = scalar_lea.vmem %s2605_s30, 128 }
 0x60e   : > { %v1333_v11 = vpop.f32.mrb[18].mxu0  ;;  %p2170_p12 = scmp.ne.s32.totalorder %s2605_s30, %s2169_s19 }
 0x60f   : > { %v2009_v12 = vpop.f32.mrb[19].mxu0 }
 0x610   : > { %p2171_p13 = pnand %p2170_p12, %p2397_p4 }
 0x612   : > { %p2172_p0 = pneg %p2171_p13 }
 0x614   : > { %v1454_v13 = vpop.f32.mrb[20].mxu0 }
 0x615   : > { %1461 = vrot.lane.b32.xlu0 %v1454_v13, %s2265_s23  ;;  %v2020_v15 = vpop.f32.mrb[21].mxu0  ;;  %s2175_s23 = scalar_lea.vmem %s2174_s5, 256 }
 0x616   : > { %v1457_v16 = vpop.f32.mrb[22].mxu0  ;;  %p2177_p2 = scmp.lt.s32.totalorder %s2175_s23, %s2169_s19 }
 0x617   : > { %v2021_v17 = vpop.f32.mrb[23].mxu0 }
 0x618   : > { %p2178_p3 = por %p2177_p2, %p2176_p1 }
 0x61a   : > { %p2179_p5 = pnand %p2178_p3, %p2172_p0 }
 0x64e   : > { %v1214_v18 = vpop.permute.xlu0 %1213 }
 0x64f   : > { %1217 = vst.msk [vmem:[#allocation3] sm:$0xff] %vm1216_vm12, %v1214_v18 }
 0x67f   : > { %v1338_v6 = vpop.permute.xlu0 %1337 }
 0x680   : > { %1341 = vst.msk [vmem:[#allocation3] sm:$0xff] %vm1340_vm13, %v1338_v6 }
 0x687   : > { %v1462_v14 = vpop.permute.xlu0 %1461 }
 0x688   : > { %1465 = vst.msk [vmem:[#allocation3] sm:$0xff] %vm1464_vm14, %v1462_v14 }
 0x68f   : > { %v1466_v19 = vld [vmem:[#allocation3] sm:$0xff] }
 0x690   : > { %v1467_v20 = vpack.c.bf16 %v1466_v19, %v1466_v19 }
 0x692   : > { %2027 = vmatmul.mubr.msk.bf16.vlgmr.msra.gmra.mrb[16].mxu1 %vm597_vm0, %v1467_v20  ;;  %v1923_v20 = vld [vmem:[%s2666_s15] ss:$0 sm:$0xff] }
 0x693   : > { %2046 = vmatprep.mubr.msk.bf16.mxu1 %vm2250_vm1, %v2249_v8  ;;  %2039 = vmatpush3.bf16.msra.mxu1 %v2135_v34 }
 0x694   : > { %2040 = vmatprep.subr.bf16.mxu1 %v2249_v8 }
 0x697   : > { %2041 = vmatpush3.bf16.msra.mxu1 %v2136_v35 }
 0x698   : > { %2042 = vmatprep.subr.bf16.mxu1 %v2249_v8 }
 0x69b   : > { %2043 = vmatpush3.bf16.msra.mxu1 %v2137_v52 }
 0x69c   : > { %2044 = vmatprep.subr.bf16.mxu1 %v2249_v8  ;;  %v1922_v8 = vld [vmem:[%s2665_s14] ss:$0 sm:$0xff] }
 0x69f   : > { %2045 = vmatpush3.bf16.msra.mxu1 %v2138_v53 }
 0x765   : > { %v1522_v21 = vpop.f32.mrb[16].mxu1 }
 0x766   : > { %v1528_v23 = vadd.f32 %v1522_v21, %v2422_v0  ;;  %v2028_v24 = vpop.f32.mrb[17].mxu1  ;;  %v2134_v0 = vld [vmem:[%s2662_s11 + $0x8] sm:$0xff]  }
 0x767   : > { %v1525_v25 = vpop.f32.mrb[18].mxu1  ;;  %2033 = vmatpush3.bf16.msra.mxu0 %v2134_v0 }
 0x768   : > { %v1536_v26 = vadd.f32 %v1910_v22, %v1528_v23  ;;  %v2029_v27 = vpop.f32.mrb[19].mxu1  ;;  %v1924_v23 = vld [vmem:[%s2667_s16] ss:$0 sm:$0xff] }
 0x76a   : > { %v1539_v38 = vsel %vm597_vm0, %v1536_v26, 0.0 }
 0x76b   : > { %1540 = vadd.xlane.f32.xlu0 %v1539_v38 }
 0x7f8   : > { %v1541_v28 = vpop.xlane.xlu0 %1540 }
 0x7f9   : > { %v1543_v29 = vmul.f32 0.03125, %v1541_v28 }
 0x7fb   : > { %v1544_v30 = vsub.f32 %v1536_v26, %v1543_v29 }
 0x7fd   : > { %v1545_v31 = vmul.f32 %v1544_v30, %v1544_v30  ;;  %v1557_v47 = vmul.f32 %v1911_v46, %v1544_v30 }
 0x7ff   : > { %v1546_v32 = vsel %vm597_vm0, %v1545_v31, 0.0 }
 0x800   : > { %1547 = vadd.xlane.f32.xlu1 %v1546_v32 }
 0x88d   : > { %v1548_v36 = vpop.xlane.xlu1 %1547 }
 0x88e   : > { %v1550_v37 = vmul.f32 0.032258064, %v1548_v36 }
 0x890   : > { %2161 = vrsqrt.f32 %v1550_v37  ;;  %vm1560_vm15 = vcmp.eq.f32.partialorder %v1550_v37, inf  ;;  %v1563_v41 = vand.u32 2147483648, %v1550_v37  ;;  %vm1562_vm1 = vcmp.eq.f32.partialorder %v1550_v37, 0.0 }
 0x89a   : > { %v2162_v40 = vpop.eup %2161 }
 0x89b   : > { %v1559_v39 = vmul.f32 %v2162_v40, %v1550_v37 }
 0x89d   : > { %v1561_v43 = vsel %vm1560_vm15, %v1550_v37, %v1559_v39 }
 0x89e   : > { %v1564_v44 = vsel %vm1562_vm1, %v1563_v41, %v1561_v43 }
 0x89f   : > { %v1565_v45 = vadd.f32 1e-06, %v1564_v44 }
 0x8a1   : > { %2163 = vrcp.f32 %v1565_v45 }
 0x8ab   : > { %v2164_v42 = vpop.eup %2163 }
 0x8ac   : > { %v1567_v49 = vmul.f32 %v2164_v42, %v1557_v47 }
 0x8ae   : > { %v1574_v50 = vadd.f32 %v1912_v48, %v1567_v49 }
 0x8b0   : > { %v1575_v51 = vpack.c.bf16 %v1574_v50, %v1574_v50 }
 0x8b2   : > { %2035 = vmatmul.mubr.msk.bf16.vlgmr.msra.gmra.mrb[24].mxu0 %vm597_vm0, %v1575_v51 }
 0x985   : > { %v1636_v55 = vpop.f32.mrb[24].mxu0 }
 0x986   : > { %v1637_v56 = vadd.f32 %v1913_v54, %v1636_v55  ;;  %v2036_v57 = vpop.f32.mrb[25].mxu0 }
 0x987   : > { %v1639_v58 = vpop.f32.mrb[26].mxu0 }
 0x988   : > { %v1642_v59 = vmax.f32 %v1637_v56, 0.0  ;;  %v2037_v60 = vpop.f32.mrb[27].mxu0 }
 0x98a   : > { %v1643_v61 = vpack.c.bf16 %v1642_v59, %v1642_v59 }
 0x98c   : > { %2047 = vmatmul.mubr.msk.bf16.vlgmr.msra.gmra.mrb[20].mxu1 %vm1676_vm2, %v1643_v61 }
 0xa5f   : > { %v1714_v62 = vpop.f32.mrb[20].mxu1 }
 0xa60   : > { %v1720_v63 = vadd.f32 %v1714_v62, %v1536_v26  ;;  %v2048_v1 = vpop.f32.mrb[21].mxu1 }
 0xa61   : > { %v1717_v2 = vpop.f32.mrb[22].mxu1 }
 0xa62   : > { %v2049_v3 = vpop.f32.mrb[23].mxu1  ;;  %v1728_v4 = vadd.f32 %v1922_v8, %v1720_v63 }
 0xa64   : > { %v1731_v5 = vsel %vm597_vm0, %v1728_v4, 0.0 }
 0xa65   : > { %1732 = vadd.xlane.f32.xlu0 %v1731_v5 }
 0xaf2   : > { %v1733_v7 = vpop.xlane.xlu0 %1732 }
 0xaf3   : > { %v1734_v9 = vmul.f32 0.03125, %v1733_v7 }
 0xaf5   : > { %v1735_v10 = vsub.f32 %v1728_v4, %v1734_v9 }
 0xaf7   : > { %v1736_v11 = vmul.f32 %v1735_v10, %v1735_v10  ;;  %v1747_v21 = vmul.f32 %v1923_v20, %v1735_v10 }
 0xaf9   : > { %v1737_v12 = vsel %vm597_vm0, %v1736_v11, 0.0 }
 0xafa   : > { %1738 = vadd.xlane.f32.xlu0 %v1737_v12 }
 0xb87   : > { %v1739_v13 = vpop.xlane.xlu0 %1738 }
 0xb88   : > { %v1740_v15 = vmul.f32 0.032258064, %v1739_v13 }
 0xb8a   : > { %2165 = vrsqrt.f32 %v1740_v15  ;;  %vm1750_vm3 = vcmp.eq.f32.partialorder %v1740_v15, inf  ;;  %v1753_v18 = vand.u32 2147483648, %v1740_v15  ;;  %vm1752_vm4 = vcmp.eq.f32.partialorder %v1740_v15, 0.0 }
 0xb94   : > { %v2166_v16 = vpop.eup %2165 }
 0xb95   : > { %v1749_v17 = vmul.f32 %v2166_v16, %v1740_v15 }
 0xb97   : > { %v1751_v6 = vsel %vm1750_vm3, %v1740_v15, %v1749_v17 }
 0xb98   : > { %v1754_v14 = vsel %vm1752_vm4, %v1753_v18, %v1751_v6 }
 0xb99   : > { %v1755_v19 = vadd.f32 1e-06, %v1754_v14 }
 0xb9b   : > { %2167 = vrcp.f32 %v1755_v19 }
 0xba5   : > { %v2168_v22 = vpop.eup %2167 }
 0xba6   : > { %v1757_v24 = vmul.f32 %v2168_v22, %v1747_v21 }
 0xba8   : > { %v1764_v25 = vadd.f32 %v1924_v23, %v1757_v24 }
 0xbaa   : > { %1765 = vst.msk [vmem:[%s577_s22] sm:$0xff] %vm597_vm0, %v1764_v25 }
 0xbab   : > { %2182 = shalt.err (!%p2179_p5)
}
 0xbac   : > { %s2183_s2 = scalar_lea.hbm %s2603_s4, 128  ;;  %s2187_s28 = scalar_lea.hbm %s2668_s17, 256 }
 0xbad   : > { %p2184_p6 = scmp.ne.s32.totalorder %s2603_s4, %s2183_s2  ;;  %p2188_p10 = scmp.lt.u32.totalorder %s2603_s4, %s2668_s17 }
 0xbae   : > { %p2189_p11 = scmp.lt.u32.totalorder %s2187_s28, %s2183_s2  ;;  %p2191_p13 = scmp.lt.u32.totalorder %s2183_s2, %s2603_s4 }
 0xbaf   : > { %p2185_p7 = pnand %p2184_p6, %p2397_p4 }
 0xbb0   : > { %p2190_p12 = por %p2189_p11, %p2188_p10 }
 0xbb1   : > { %p2186_p9 = pneg %p2185_p7 }
 0xbb2   : > { %p2192_p0 = por %p2191_p13, %p2190_p12 }
 0xbb4   : > { %p2193_p1 = pnand %p2192_p0, %p2186_p9 }
 0xbb6   : > { %2196 = shalt.err (!%p2193_p1)
}
 0xbb7   : > { %2050 = dma.vmem_to_hbm [thread:$0]  (%p2397_p4), %s2605_s30, 128, %s2603_s4, %s1767_s0  }
 0xbb8 PF: > { %p2056_p2 = scmp.ge.s32.totalorder %s2247_s29, 2  ;;  %s1793_s19 = sand.u32 1, %s2227_s24  }
 0xbb9   : > { %s1794_s27 = scalar_lea.sflag [#allocation5], %s1793_s19 }
 0xbba   : > { %p2053_p3 = pnand %p2056_p2, %p2404_p8 }
 0xbbc   : > { %2222 = dma.done.wait (!%p2053_p3), %s1794_s27, 128  }
 0xbbd   : > { %2224 = vsyncadd (!%p2053_p3), %s1794_s27, 4294967168  ;;  %s30_s29 = sadd.s32 1, %s2247_s29   ;;  %s2688_s1 = sld [smem:[#allocation9_spill]] }
 0xbbe   : > { %p27_p5 = scmp.ge.s32.totalorder %s30_s29, 4   ;;  %s2689_s27 = sld [smem:[#allocation7_spill]] }
 0xbbf   : > { %s2690_s28 = sld [smem:[#allocation8_spill]]  ;;  %s2691_s24 = smov %s2231_s25 }
 0xbc0   : > { %s2692_s25 = smov %s2235_s26  ;;  %29 = sbr.rel (!%p27_p5) target bundleno = 11 (0xb), region = 136 }
 0xbc3   : > { %s2693_s26 = smov %s2688_s1 }
 0xbc7   :  { %1799 = vsyncpa [#allocation5], 1 }
 0xbc8   :  { %1801 = vsyncpa [#allocation5 + $0x1], 1 }

</bundles_post_ra>
